<compile_context>
chip_gen: v7x
topology: tpu7x:2x2x1
jax: 0.10.0
libtpu: 0.0.40
codegen_flags: <defaults>
</compile_context>

<pallas_src>
import functools

import jax
import jax.numpy as jnp
from jax.experimental import pallas as pl
from jax.experimental.pallas import tpu as pltpu

BN_EPS = 1e-5
LANES = 128


# ------------------------------ kernel helpers ------------------------------

def _conv_bn_pool_stage(x, w, b, wa, *, K, stride, Lout, Lhalf):
    """One fused (Conv1d + folded BN) + AttentionPool(pool=2) stage on VMEM values.

    x  : (Lin, C)   f32 activations (channels-last, C = LANES, zero-padded lanes)
    w  : (K*C, C)   f32 im2col conv weight with BN scale folded in
    b  : (1, C)     f32 fused bias ((conv_b - mu) * scale + beta)
    wa : (C, C)     f32 attention-logit weight (pre-transposed, zero-padded)
    ->   (Lhalf, C) f32 attention-pooled output
    """
    Lin, C = x.shape
    Lpad = 2 * Lhalf                       # pool-padded conv length (even)
    need = (K - 1) + stride * Lpad         # input rows touched by the im2col reads
    if need > Lin:
        x = jnp.concatenate([x, jnp.zeros((need - Lin, C), x.dtype)], axis=0)

    # im2col over ALL Lpad conv/pool positions -> ONE well-filled MXU matmul.
    taps = []
    for k in range(K):
        if stride == 1:
            taps.append(x[k:k + Lpad, :])
        else:
            # TODO(synk): stride>1 path uses a row-pair merging reshape; revalidate its
            # Mosaic lowering before using a non-unit stride at scale.
            taps.append(x[k:k + stride * Lpad, :].reshape(Lpad, stride * C)[:, :C])
    xi = taps[0] if K == 1 else jnp.concatenate(taps, axis=-1)        # (Lpad, K*C)

    y = jnp.dot(xi, w, preferred_element_type=jnp.float32) + b        # (Lpad, C)

    # Odd Lout: the last (odd) pool member is zero padding that still votes in the
    # softmax with logit 0 (AttentionPool with mask=None semantics).
    if Lpad != Lout:
        row = jax.lax.broadcasted_iota(jnp.int32, y.shape, 0)
        y = jnp.where(row < Lout, y, 0.0)

    logits = jnp.dot(y, wa, preferred_element_type=jnp.float32)       # (Lpad, C)

    # Even/odd de-interleave via a tiny 0/1 selection matmul: rows [0:Lhalf] of `sel`
    # pick y[0], y[2], ...; rows [Lhalf:] pick y[1], y[3], ... .  Only contiguous
    # slices are needed afterwards (no strided slices / interleaving reshapes).
    r = jax.lax.broadcasted_iota(jnp.int32, (Lpad, Lpad), 0)
    t = jax.lax.broadcasted_iota(jnp.int32, (Lpad, Lpad), 1)
    src = jnp.where(r < Lhalf, 2 * r, 2 * (r - Lhalf) + 1)
    sel = (t == src).astype(jnp.float32)                               # (Lpad, Lpad)
    yl = jnp.concatenate([y, logits], axis=-1)                         # (Lpad, 2C)
    d = jnp.dot(sel, yl, preferred_element_type=jnp.float32)           # (Lpad, 2C)
    y_e, l_e = d[:Lhalf, :C], d[:Lhalf, C:]
    y_o, l_o = d[Lhalf:, :C], d[Lhalf:, C:]

    # 2-element softmax == sigmoid of the logit difference (per channel, over the pool).
    a_e = jax.nn.sigmoid(l_e - l_o)
    return y_o + (y_e - y_o) * a_e                                     # (Lhalf, C)


def _fused_kernel(x_ref, *refs, stride, Cin, Cout_final, Ks, meta):
    """All conv/BN/pool stages back-to-back; intermediates stay in VMEM/vregs."""
    o_ref = refs[-1]
    wrefs = refs[:-1]

    x = x_ref[...][0]                                      # (L0, Cin) f32, true width
    if Cin < LANES:                                        # lane-dense pad in VMEM only
        x = jnp.concatenate(
            [x, jnp.zeros((x.shape[0], LANES - Cin), x.dtype)], axis=-1)

    for si, (Lout, Lhalf) in enumerate(meta):
        w = wrefs[3 * si][...]
        b = wrefs[3 * si + 1][...]
        wa = wrefs[3 * si + 2][...]
        x = _conv_bn_pool_stage(x, w, b, wa, K=Ks[si], stride=stride,
                                Lout=Lout, Lhalf=Lhalf)

    o_ref[...] = x[:, :Cout_final][None, :, :]             # write true-Cout lanes only


# ------------------------------ forward wrapper ------------------------------

def dynamic_conv_block_forward(x_ncl, prepared, stride):
    """x_ncl: (B, Cin, L) f32 (PyTorch NCL) -> (B, Cout_final, Lf) f32."""
    B, Cin, L0 = x_ncl.shape
    assert Cin == prepared[0]['Cin'], (Cin, prepared[0]['Cin'])
    x_nlc = jnp.transpose(x_ncl, (0, 2, 1))                # NCL -> NLC, true channel width

    # static per-stage output lengths
    meta = []
    Lin = L0
    for sp in prepared:
        Lout = (Lin - sp['K']) // stride + 1
        Lhalf = (Lout + 1) // 2
        meta.append((Lout, Lhalf))
        Lin = Lhalf
    Lf = Lin
    Cout_f = prepared[-1]['Cout']

    kernel = functools.partial(
        _fused_kernel, stride=stride, Cin=Cin, Cout_final=Cout_f,
        Ks=tuple(sp['K'] for sp in prepared), meta=tuple(meta))

    weights = []
    in_specs = [pl.BlockSpec((1, L0, Cin), lambda bb: (bb, 0, 0))]
    for sp in prepared:
        weights += [sp['w'], sp['b'], sp['wa']]
        in_specs += [pl.BlockSpec(sp['w'].shape, lambda bb: (0, 0)),
                     pl.BlockSpec(sp['b'].shape, lambda bb: (0, 0)),
                     pl.BlockSpec(sp['wa'].shape, lambda bb: (0, 0))]

    out = pl.pallas_call(
        kernel,
        out_shape=jax.ShapeDtypeStruct((B, Lf, Cout_f), jnp.float32),
        grid=(B,),
        in_specs=in_specs,
        out_specs=pl.BlockSpec((1, Lf, Cout_f), lambda bb: (bb, 0, 0)),
        compiler_params=pltpu.CompilerParams(dimension_semantics=("parallel",)),
    )(x_nlc, *weights)

    return jnp.transpose(out, (0, 2, 1))                   # back to PyTorch NCL


# ------------------- parameter prep (run ONCE at init) ---------------------

def prepare_stage_params(params):
    """Fold Conv1d bias + BatchNorm1d (running stats) into one im2col weight and one
    bias row; pad channels to a lane-dense 128 (zeros never contaminate real lanes)."""
    w, b, gamma, beta, mu, var, wattn = params             # PyTorch-layout parameters
    Cout, Cin, K = w.shape
    assert Cin <= LANES and Cout <= LANES  # TODO(synk): >128 channels needs multi-tile lanes

    scale = gamma * jax.lax.rsqrt(var + BN_EPS)                        # (Cout,)
    wk = jnp.transpose(w, (2, 1, 0)) * scale                           # (K, Cin, Cout)
    wk = jnp.pad(wk, ((0, 0), (0, LANES - Cin), (0, LANES - Cout)))
    w_f = wk.reshape(K * LANES, LANES).astype(jnp.float32)             # im2col layout

    b_f = (b - mu) * scale + beta
    b_f = jnp.pad(b_f, (0, LANES - Cout)).reshape(1, LANES).astype(jnp.float32)

    wa = jnp.pad(jnp.transpose(wattn),                                 # logits = y @ wattn.T
                 ((0, LANES - Cout), (0, LANES - Cout))).astype(jnp.float32)

    return dict(w=w_f, b=b_f, wa=wa, K=K, Cin=Cin, Cout=Cout)


# ---------------- module construction (deterministic, synthetic) -----------

def exponential_linspace_int(start, end, num, divisible_by=1):
    if num == 1:
        return [end]
    result = [start]
    base = (end / start) ** (1 / (num - 1))
    for i in range(1, num):
        result.append(int(divisible_by * round(start * base ** i / divisible_by)))
    return result


def init_dynamic_conv_block(key, in_filters, final_out_filters, num_layers, tuning_params):
    K = tuning_params['kernel_size']
    filter_list = exponential_linspace_int(in_filters, final_out_filters, num_layers - 1)
    filter_lists = [in_filters, *filter_list]
    dims = list(zip(filter_lists[:-1], filter_lists[1:]))
    dims.append((filter_list[-1], final_out_filters))      # final conv block
    stages = []
    for (din, dout) in dims:
        key, k1, k2, k3, k4, k5, k6, k7 = jax.random.split(key, 8)
        w = 0.2 * jax.random.normal(k1, (dout, din, K), jnp.float32)    # Conv1d.weight
        b = 0.1 * jax.random.normal(k2, (dout,), jnp.float32)           # Conv1d.bias
        gamma = 1.0 + 0.1 * jax.random.normal(k3, (dout,), jnp.float32)
        beta = 0.1 * jax.random.normal(k4, (dout,), jnp.float32)
        mu = 0.1 * jax.random.normal(k5, (dout,), jnp.float32)          # running_mean
        var = 1.0 + 0.1 * jax.random.uniform(k6, (dout,), jnp.float32)  # running_var
        # AttentionPool init is dirac_*2 (= 2*I); add a non-symmetric perturbation so a
        # transposed attention weight would be caught by the test.
        wattn = 2.0 * jnp.eye(dout, dtype=jnp.float32) \
            + 0.05 * jax.random.normal(k7, (dout, dout), jnp.float32)
        stages.append((w, b, gamma, beta, mu, var, wattn))
    return stages


# ---------------- pure-JAX reference (for correctness check) ----------------

def _ref_forward(x_ncl, stages, stride):
    x = x_ncl
    for (w, b, gamma, beta, mu, var, wattn) in stages:
        y = jax.lax.conv_general_dilated(x, w, (stride,), 'VALID',
                                         dimension_numbers=('NCH', 'OIH', 'NCH'))
        y = y + b[None, :, None]
        y = (y - mu[None, :, None]) / jnp.sqrt(var[None, :, None] + BN_EPS) \
            * gamma[None, :, None] + beta[None, :, None]
        Bn, C, L = y.shape
        rem = L % 2
        if rem:
            y = jnp.pad(y, ((0, 0), (0, 0), (0, rem)))
        yp = y.reshape(Bn, C, y.shape[2] // 2, 2)
        logits = jnp.einsum('oc,bcnp->bonp', wattn, yp)
        attn = jax.nn.softmax(logits, axis=-1)
        x = (yp * attn).sum(-1)
    return x


if __name__ == "__main__":
    key = jax.random.PRNGKey(0)
    kx, kp = jax.random.split(key)

    B, Cin, L = 2, 4, 64
    in_filters, final_out_filters, num_layers = Cin, 8, 3
    tuning_params = {'kernel_size': 3, 'stride': 1}
    stride = tuning_params.get('stride', 1)

    x = jax.random.normal(kx, (B, Cin, L), jnp.float32)    # PyTorch NCL input
    stages = init_dynamic_conv_block(kp, in_filters, final_out_filters,
                                     num_layers, tuning_params)

    # parameter folding / padding: once, outside the forward path
    prepared = [prepare_stage_params(p) for p in stages]

    out = dynamic_conv_block_forward(x, prepared, stride)
    out = jax.block_until_ready(out)

    ref = _ref_forward(x, stages, stride)
    assert out.shape == ref.shape, (out.shape, ref.shape)
    assert jnp.allclose(out, ref, atol=2e-2, rtol=2e-2), \
        float(jnp.max(jnp.abs(out - ref)))

    print("KERNEL_OK")
</pallas_src>

<mosaic_0001>
module attributes {stable_mosaic.version = 11 : i64} {
  func.func @_fused_kernel(%arg0: i32, %arg1: memref<1x64x4xf32, #tpu.memory_space<vmem>>, %arg2: memref<384x128xf32, #tpu.memory_space<vmem>>, %arg3: memref<1x128xf32, #tpu.memory_space<vmem>>, %arg4: memref<128x128xf32, #tpu.memory_space<vmem>>, %arg5: memref<384x128xf32, #tpu.memory_space<vmem>>, %arg6: memref<1x128xf32, #tpu.memory_space<vmem>>, %arg7: memref<128x128xf32, #tpu.memory_space<vmem>>, %arg8: memref<384x128xf32, #tpu.memory_space<vmem>>, %arg9: memref<1x128xf32, #tpu.memory_space<vmem>>, %arg10: memref<128x128xf32, #tpu.memory_space<vmem>>, %arg11: memref<1x7x8xf32, #tpu.memory_space<vmem>>) attributes {dimension_semantics = [#tpu.dimension_semantics<parallel>], iteration_bounds = array<i64: 2>, scalar_prefetch = 0 : i64, scratch_operands = 0 : i64, tpu.core_type = #tpu.core_type<tc>, window_params = [{transform_indices = @transform_0, window_bounds = array<i64: 1, 64, 4>}, {pipeline_mode = #tpu.pipeline_mode<synchronous>, transform_indices = @transform_1, window_bounds = array<i64: 384, 128>}, {pipeline_mode = #tpu.pipeline_mode<synchronous>, transform_indices = @transform_2, window_bounds = array<i64: 1, 128>}, {pipeline_mode = #tpu.pipeline_mode<synchronous>, transform_indices = @transform_3, window_bounds = array<i64: 128, 128>}, {pipeline_mode = #tpu.pipeline_mode<synchronous>, transform_indices = @transform_4, window_bounds = array<i64: 384, 128>}, {pipeline_mode = #tpu.pipeline_mode<synchronous>, transform_indices = @transform_5, window_bounds = array<i64: 1, 128>}, {pipeline_mode = #tpu.pipeline_mode<synchronous>, transform_indices = @transform_6, window_bounds = array<i64: 128, 128>}, {pipeline_mode = #tpu.pipeline_mode<synchronous>, transform_indices = @transform_7, window_bounds = array<i64: 384, 128>}, {pipeline_mode = #tpu.pipeline_mode<synchronous>, transform_indices = @transform_8, window_bounds = array<i64: 1, 128>}, {pipeline_mode = #tpu.pipeline_mode<synchronous>, transform_indices = @transform_9, window_bounds = array<i64: 128, 128>}, {transform_indices = @transform_10, window_bounds = array<i64: 1, 7, 8>}]} {
    %c0 = arith.constant 0 : index
    %c0_0 = arith.constant 0 : index
    %c0_1 = arith.constant 0 : index
    %0 = vector.load %arg1[%c0, %c0_0, %c0_1] : memref<1x64x4xf32, #tpu.memory_space<vmem>>, vector<1x64x4xf32>
    %1 = vector.shape_cast %0 : vector<1x64x4xf32> to vector<64x4xf32>
    %cst = arith.constant 0.000000e+00 : f32
    %2 = vector.broadcast %cst : f32 to vector<64x124xf32>
    %3 = tpu.concatenate %1, %2 in 1 : vector<64x4xf32>, vector<64x124xf32> -> vector<64x128xf32>
    %c0_2 = arith.constant 0 : index
    %c0_3 = arith.constant 0 : index
    %4 = vector.load %arg2[%c0_2, %c0_3] : memref<384x128xf32, #tpu.memory_space<vmem>>, vector<384x128xf32>
    %c0_4 = arith.constant 0 : index
    %c0_5 = arith.constant 0 : index
    %5 = vector.load %arg3[%c0_4, %c0_5] : memref<1x128xf32, #tpu.memory_space<vmem>>, vector<1x128xf32>
    %c0_6 = arith.constant 0 : index
    %c0_7 = arith.constant 0 : index
    %6 = vector.load %arg4[%c0_6, %c0_7] : memref<128x128xf32, #tpu.memory_space<vmem>>, vector<128x128xf32>
    %7 = vector.extract_strided_slice %3 {offsets = [0, 0], sizes = [62, 128], strides = [1, 1]} : vector<64x128xf32> to vector<62x128xf32>
    %8 = vector.extract_strided_slice %3 {offsets = [1, 0], sizes = [62, 128], strides = [1, 1]} : vector<64x128xf32> to vector<62x128xf32>
    %9 = vector.extract_strided_slice %3 {offsets = [2, 0], sizes = [62, 128], strides = [1, 1]} : vector<64x128xf32> to vector<62x128xf32>
    %10 = tpu.concatenate %7, %8, %9 in 1 : vector<62x128xf32>, vector<62x128xf32>, vector<62x128xf32> -> vector<62x384xf32>
    %cst_8 = arith.constant dense<0.000000e+00> : vector<62x128xf32>
    %11 = tpu.matmul %10, %4, %cst_8 {dimension_numbers = #tpu.dot_dimension_numbers<[1], [0], [0], [1], [0, 0, 1, 1], [], []>} : vector<62x384xf32>, vector<384x128xf32>, vector<62x128xf32> -> vector<62x128xf32>
    %12 = vector.broadcast %5 : vector<1x128xf32> to vector<62x128xf32>
    %13 = arith.addf %11, %12 : vector<62x128xf32>
    %cst_9 = arith.constant dense<0.000000e+00> : vector<62x128xf32>
    %14 = tpu.matmul %13, %6, %cst_9 {dimension_numbers = #tpu.dot_dimension_numbers<[1], [0], [0], [1], [0, 0, 1, 1], [], []>} : vector<62x128xf32>, vector<128x128xf32>, vector<62x128xf32> -> vector<62x128xf32>
    %15 = tpu.iota {dimensions = array<i32: 0>} : vector<62x62xi32>
    %16 = tpu.iota {dimensions = array<i32: 1>} : vector<62x62xi32>
    %c31_i32 = arith.constant 31 : i32
    %17 = vector.broadcast %c31_i32 : i32 to vector<62x62xi32>
    %18 = arith.cmpi slt, %15, %17 : vector<62x62xi32>
    %c2_i32 = arith.constant 2 : i32
    %19 = vector.broadcast %c2_i32 : i32 to vector<62x62xi32>
    %20 = arith.muli %19, %15 : vector<62x62xi32>
    %c31_i32_10 = arith.constant 31 : i32
    %21 = vector.broadcast %c31_i32_10 : i32 to vector<62x62xi32>
    %22 = arith.subi %15, %21 : vector<62x62xi32>
    %c2_i32_11 = arith.constant 2 : i32
    %23 = vector.broadcast %c2_i32_11 : i32 to vector<62x62xi32>
    %24 = arith.muli %23, %22 : vector<62x62xi32>
    %c1_i32 = arith.constant 1 : i32
    %25 = vector.broadcast %c1_i32 : i32 to vector<62x62xi32>
    %26 = arith.addi %24, %25 : vector<62x62xi32>
    %27 = arith.select %18, %20, %26 : vector<62x62xi1>, vector<62x62xi32>
    %28 = arith.cmpi eq, %16, %27 : vector<62x62xi32>
    %29 = arith.extui %28 : vector<62x62xi1> to vector<62x62xi32>
    %30 = arith.sitofp %29 : vector<62x62xi32> to vector<62x62xf32>
    %31 = tpu.concatenate %13, %14 in 1 : vector<62x128xf32>, vector<62x128xf32> -> vector<62x256xf32>
    %cst_12 = arith.constant dense<0.000000e+00> : vector<62x256xf32>
    %32 = tpu.matmul %30, %31, %cst_12 {dimension_numbers = #tpu.dot_dimension_numbers<[1], [0], [0], [1], [0, 0, 1, 1], [], []>} : vector<62x62xf32>, vector<62x256xf32>, vector<62x256xf32> -> vector<62x256xf32>
    %33 = vector.extract_strided_slice %32 {offsets = [0, 0], sizes = [31, 128], strides = [1, 1]} : vector<62x256xf32> to vector<31x128xf32>
    %34 = vector.extract_strided_slice %32 {offsets = [0, 128], sizes = [31, 128], strides = [1, 1]} : vector<62x256xf32> to vector<31x128xf32>
    %35 = vector.extract_strided_slice %32 {offsets = [31, 0], sizes = [31, 128], strides = [1, 1]} : vector<62x256xf32> to vector<31x128xf32>
    %36 = vector.extract_strided_slice %32 {offsets = [31, 128], sizes = [31, 128], strides = [1, 1]} : vector<62x256xf32> to vector<31x128xf32>
    %37 = arith.subf %34, %36 : vector<31x128xf32>
    %38 = arith.negf %37 : vector<31x128xf32>
    %39 = math.exp %38 : vector<31x128xf32>
    %cst_13 = arith.constant 1.000000e+00 : f32
    %40 = vector.broadcast %cst_13 : f32 to vector<31x128xf32>
    %41 = arith.addf %40, %39 : vector<31x128xf32>
    %42 = arith.divf %40, %41 : vector<31x128xf32>
    %43 = arith.subf %33, %35 : vector<31x128xf32>
    %44 = arith.mulf %43, %42 : vector<31x128xf32>
    %45 = arith.addf %35, %44 : vector<31x128xf32>
    %c0_14 = arith.constant 0 : index
    %c0_15 = arith.constant 0 : index
    %46 = vector.load %arg5[%c0_14, %c0_15] : memref<384x128xf32, #tpu.memory_space<vmem>>, vector<384x128xf32>
    %c0_16 = arith.constant 0 : index
    %c0_17 = arith.constant 0 : index
    %47 = vector.load %arg6[%c0_16, %c0_17] : memref<1x128xf32, #tpu.memory_space<vmem>>, vector<1x128xf32>
    %c0_18 = arith.constant 0 : index
    %c0_19 = arith.constant 0 : index
    %48 = vector.load %arg7[%c0_18, %c0_19] : memref<128x128xf32, #tpu.memory_space<vmem>>, vector<128x128xf32>
    %cst_20 = arith.constant 0.000000e+00 : f32
    %49 = vector.broadcast %cst_20 : f32 to vector<1x128xf32>
    %50 = tpu.concatenate %45, %49 in 0 : vector<31x128xf32>, vector<1x128xf32> -> vector<32x128xf32>
    %51 = vector.extract_strided_slice %50 {offsets = [0, 0], sizes = [30, 128], strides = [1, 1]} : vector<32x128xf32> to vector<30x128xf32>
    %52 = vector.extract_strided_slice %50 {offsets = [1, 0], sizes = [30, 128], strides = [1, 1]} : vector<32x128xf32> to vector<30x128xf32>
    %53 = vector.extract_strided_slice %50 {offsets = [2, 0], sizes = [30, 128], strides = [1, 1]} : vector<32x128xf32> to vector<30x128xf32>
    %54 = tpu.concatenate %51, %52, %53 in 1 : vector<30x128xf32>, vector<30x128xf32>, vector<30x128xf32> -> vector<30x384xf32>
    %cst_21 = arith.constant dense<0.000000e+00> : vector<30x128xf32>
    %55 = tpu.matmul %54, %46, %cst_21 {dimension_numbers = #tpu.dot_dimension_numbers<[1], [0], [0], [1], [0, 0, 1, 1], [], []>} : vector<30x384xf32>, vector<384x128xf32>, vector<30x128xf32> -> vector<30x128xf32>
    %56 = vector.broadcast %47 : vector<1x128xf32> to vector<30x128xf32>
    %57 = arith.addf %55, %56 : vector<30x128xf32>
    %58 = tpu.iota {dimensions = array<i32: 0>} : vector<30x128xi32>
    %c29_i32 = arith.constant 29 : i32
    %59 = vector.broadcast %c29_i32 : i32 to vector<30x128xi32>
    %60 = arith.cmpi slt, %58, %59 : vector<30x128xi32>
    %cst_22 = arith.constant 0.000000e+00 : f32
    %61 = vector.broadcast %cst_22 : f32 to vector<30x128xf32>
    %62 = arith.select %60, %57, %61 : vector<30x128xi1>, vector<30x128xf32>
    %cst_23 = arith.constant dense<0.000000e+00> : vector<30x128xf32>
    %63 = tpu.matmul %62, %48, %cst_23 {dimension_numbers = #tpu.dot_dimension_numbers<[1], [0], [0], [1], [0, 0, 1, 1], [], []>} : vector<30x128xf32>, vector<128x128xf32>, vector<30x128xf32> -> vector<30x128xf32>
    %64 = tpu.iota {dimensions = array<i32: 0>} : vector<30x30xi32>
    %65 = tpu.iota {dimensions = array<i32: 1>} : vector<30x30xi32>
    %c15_i32 = arith.constant 15 : i32
    %66 = vector.broadcast %c15_i32 : i32 to vector<30x30xi32>
    %67 = arith.cmpi slt, %64, %66 : vector<30x30xi32>
    %c2_i32_24 = arith.constant 2 : i32
    %68 = vector.broadcast %c2_i32_24 : i32 to vector<30x30xi32>
    %69 = arith.muli %68, %64 : vector<30x30xi32>
    %c15_i32_25 = arith.constant 15 : i32
    %70 = vector.broadcast %c15_i32_25 : i32 to vector<30x30xi32>
    %71 = arith.subi %64, %70 : vector<30x30xi32>
    %c2_i32_26 = arith.constant 2 : i32
    %72 = vector.broadcast %c2_i32_26 : i32 to vector<30x30xi32>
    %73 = arith.muli %72, %71 : vector<30x30xi32>
    %c1_i32_27 = arith.constant 1 : i32
    %74 = vector.broadcast %c1_i32_27 : i32 to vector<30x30xi32>
    %75 = arith.addi %73, %74 : vector<30x30xi32>
    %76 = arith.select %67, %69, %75 : vector<30x30xi1>, vector<30x30xi32>
    %77 = arith.cmpi eq, %65, %76 : vector<30x30xi32>
    %78 = arith.extui %77 : vector<30x30xi1> to vector<30x30xi32>
    %79 = arith.sitofp %78 : vector<30x30xi32> to vector<30x30xf32>
    %80 = tpu.concatenate %62, %63 in 1 : vector<30x128xf32>, vector<30x128xf32> -> vector<30x256xf32>
    %cst_28 = arith.constant dense<0.000000e+00> : vector<30x256xf32>
    %81 = tpu.matmul %79, %80, %cst_28 {dimension_numbers = #tpu.dot_dimension_numbers<[1], [0], [0], [1], [0, 0, 1, 1], [], []>} : vector<30x30xf32>, vector<30x256xf32>, vector<30x256xf32> -> vector<30x256xf32>
    %82 = vector.extract_strided_slice %81 {offsets = [0, 0], sizes = [15, 128], strides = [1, 1]} : vector<30x256xf32> to vector<15x128xf32>
    %83 = vector.extract_strided_slice %81 {offsets = [0, 128], sizes = [15, 128], strides = [1, 1]} : vector<30x256xf32> to vector<15x128xf32>
    %84 = vector.extract_strided_slice %81 {offsets = [15, 0], sizes = [15, 128], strides = [1, 1]} : vector<30x256xf32> to vector<15x128xf32>
    %85 = vector.extract_strided_slice %81 {offsets = [15, 128], sizes = [15, 128], strides = [1, 1]} : vector<30x256xf32> to vector<15x128xf32>
    %86 = arith.subf %83, %85 : vector<15x128xf32>
    %87 = arith.negf %86 : vector<15x128xf32>
    %88 = math.exp %87 : vector<15x128xf32>
    %cst_29 = arith.constant 1.000000e+00 : f32
    %89 = vector.broadcast %cst_29 : f32 to vector<15x128xf32>
    %90 = arith.addf %89, %88 : vector<15x128xf32>
    %91 = arith.divf %89, %90 : vector<15x128xf32>
    %92 = arith.subf %82, %84 : vector<15x128xf32>
    %93 = arith.mulf %92, %91 : vector<15x128xf32>
    %94 = arith.addf %84, %93 : vector<15x128xf32>
    %c0_30 = arith.constant 0 : index
    %c0_31 = arith.constant 0 : index
    %95 = vector.load %arg8[%c0_30, %c0_31] : memref<384x128xf32, #tpu.memory_space<vmem>>, vector<384x128xf32>
    %c0_32 = arith.constant 0 : index
    %c0_33 = arith.constant 0 : index
    %96 = vector.load %arg9[%c0_32, %c0_33] : memref<1x128xf32, #tpu.memory_space<vmem>>, vector<1x128xf32>
    %c0_34 = arith.constant 0 : index
    %c0_35 = arith.constant 0 : index
    %97 = vector.load %arg10[%c0_34, %c0_35] : memref<128x128xf32, #tpu.memory_space<vmem>>, vector<128x128xf32>
    %cst_36 = arith.constant 0.000000e+00 : f32
    %98 = vector.broadcast %cst_36 : f32 to vector<1x128xf32>
    %99 = tpu.concatenate %94, %98 in 0 : vector<15x128xf32>, vector<1x128xf32> -> vector<16x128xf32>
    %100 = vector.extract_strided_slice %99 {offsets = [0, 0], sizes = [14, 128], strides = [1, 1]} : vector<16x128xf32> to vector<14x128xf32>
    %101 = vector.extract_strided_slice %99 {offsets = [1, 0], sizes = [14, 128], strides = [1, 1]} : vector<16x128xf32> to vector<14x128xf32>
    %102 = vector.extract_strided_slice %99 {offsets = [2, 0], sizes = [14, 128], strides = [1, 1]} : vector<16x128xf32> to vector<14x128xf32>
    %103 = tpu.concatenate %100, %101, %102 in 1 : vector<14x128xf32>, vector<14x128xf32>, vector<14x128xf32> -> vector<14x384xf32>
    %cst_37 = arith.constant dense<0.000000e+00> : vector<14x128xf32>
    %104 = tpu.matmul %103, %95, %cst_37 {dimension_numbers = #tpu.dot_dimension_numbers<[1], [0], [0], [1], [0, 0, 1, 1], [], []>} : vector<14x384xf32>, vector<384x128xf32>, vector<14x128xf32> -> vector<14x128xf32>
    %105 = vector.broadcast %96 : vector<1x128xf32> to vector<14x128xf32>
    %106 = arith.addf %104, %105 : vector<14x128xf32>
    %107 = tpu.iota {dimensions = array<i32: 0>} : vector<14x128xi32>
    %c13_i32 = arith.constant 13 : i32
    %108 = vector.broadcast %c13_i32 : i32 to vector<14x128xi32>
    %109 = arith.cmpi slt, %107, %108 : vector<14x128xi32>
    %cst_38 = arith.constant 0.000000e+00 : f32
    %110 = vector.broadcast %cst_38 : f32 to vector<14x128xf32>
    %111 = arith.select %109, %106, %110 : vector<14x128xi1>, vector<14x128xf32>
    %cst_39 = arith.constant dense<0.000000e+00> : vector<14x128xf32>
    %112 = tpu.matmul %111, %97, %cst_39 {dimension_numbers = #tpu.dot_dimension_numbers<[1], [0], [0], [1], [0, 0, 1, 1], [], []>} : vector<14x128xf32>, vector<128x128xf32>, vector<14x128xf32> -> vector<14x128xf32>
    %113 = tpu.iota {dimensions = array<i32: 0>} : vector<14x14xi32>
    %114 = tpu.iota {dimensions = array<i32: 1>} : vector<14x14xi32>
    %c7_i32 = arith.constant 7 : i32
    %115 = vector.broadcast %c7_i32 : i32 to vector<14x14xi32>
    %116 = arith.cmpi slt, %113, %115 : vector<14x14xi32>
    %c2_i32_40 = arith.constant 2 : i32
    %117 = vector.broadcast %c2_i32_40 : i32 to vector<14x14xi32>
    %118 = arith.muli %117, %113 : vector<14x14xi32>
    %c7_i32_41 = arith.constant 7 : i32
    %119 = vector.broadcast %c7_i32_41 : i32 to vector<14x14xi32>
    %120 = arith.subi %113, %119 : vector<14x14xi32>
    %c2_i32_42 = arith.constant 2 : i32
    %121 = vector.broadcast %c2_i32_42 : i32 to vector<14x14xi32>
    %122 = arith.muli %121, %120 : vector<14x14xi32>
    %c1_i32_43 = arith.constant 1 : i32
    %123 = vector.broadcast %c1_i32_43 : i32 to vector<14x14xi32>
    %124 = arith.addi %122, %123 : vector<14x14xi32>
    %125 = arith.select %116, %118, %124 : vector<14x14xi1>, vector<14x14xi32>
    %126 = arith.cmpi eq, %114, %125 : vector<14x14xi32>
    %127 = arith.extui %126 : vector<14x14xi1> to vector<14x14xi32>
    %128 = arith.sitofp %127 : vector<14x14xi32> to vector<14x14xf32>
    %129 = tpu.concatenate %111, %112 in 1 : vector<14x128xf32>, vector<14x128xf32> -> vector<14x256xf32>
    %cst_44 = arith.constant dense<0.000000e+00> : vector<14x256xf32>
    %130 = tpu.matmul %128, %129, %cst_44 {dimension_numbers = #tpu.dot_dimension_numbers<[1], [0], [0], [1], [0, 0, 1, 1], [], []>} : vector<14x14xf32>, vector<14x256xf32>, vector<14x256xf32> -> vector<14x256xf32>
    %131 = vector.extract_strided_slice %130 {offsets = [0, 0], sizes = [7, 128], strides = [1, 1]} : vector<14x256xf32> to vector<7x128xf32>
    %132 = vector.extract_strided_slice %130 {offsets = [0, 128], sizes = [7, 128], strides = [1, 1]} : vector<14x256xf32> to vector<7x128xf32>
    %133 = vector.extract_strided_slice %130 {offsets = [7, 0], sizes = [7, 128], strides = [1, 1]} : vector<14x256xf32> to vector<7x128xf32>
    %134 = vector.extract_strided_slice %130 {offsets = [7, 128], sizes = [7, 128], strides = [1, 1]} : vector<14x256xf32> to vector<7x128xf32>
    %135 = arith.subf %132, %134 : vector<7x128xf32>
    %136 = arith.negf %135 : vector<7x128xf32>
    %137 = math.exp %136 : vector<7x128xf32>
    %cst_45 = arith.constant 1.000000e+00 : f32
    %138 = vector.broadcast %cst_45 : f32 to vector<7x128xf32>
    %139 = arith.addf %138, %137 : vector<7x128xf32>
    %140 = arith.divf %138, %139 : vector<7x128xf32>
    %141 = arith.subf %131, %133 : vector<7x128xf32>
    %142 = arith.mulf %141, %140 : vector<7x128xf32>
    %143 = arith.addf %133, %142 : vector<7x128xf32>
    %144 = vector.extract_strided_slice %143 {offsets = [0, 0], sizes = [7, 8], strides = [1, 1]} : vector<7x128xf32> to vector<7x8xf32>
    %145 = vector.shape_cast %144 : vector<7x8xf32> to vector<1x7x8xf32>
    %c0_46 = arith.constant 0 : index
    %c0_47 = arith.constant 0 : index
    %c0_48 = arith.constant 0 : index
    %146 = vector.load %arg11[%c0_46, %c0_47, %c0_48] : memref<1x7x8xf32, #tpu.memory_space<vmem>>, vector<1x7x8xf32>
    tpu.vector_store %arg11[%c0_46, %c0_47, %c0_48], %145 {strides = array<i32>} : memref<1x7x8xf32, #tpu.memory_space<vmem>>, vector<1x7x8xf32>,
    return
  }
  func.func @transform_0(%arg0: i32) -> (i32, i32, i32) {
    %c0_i32 = arith.constant 0 : i32
    %c0_i32_0 = arith.constant 0 : i32
    %c0_i32_1 = arith.constant 0 : i32
    return %arg0, %c0_i32, %c0_i32_0 : i32, i32, i32
  }
  func.func @transform_1(%arg0: i32) -> (i32, i32) {
    %c0_i32 = arith.constant 0 : i32
    %c0_i32_0 = arith.constant 0 : i32
    %c0_i32_1 = arith.constant 0 : i32
    return %c0_i32, %c0_i32_0 : i32, i32
  }
  func.func @transform_2(%arg0: i32) -> (i32, i32) {
    %c0_i32 = arith.constant 0 : i32
    %c0_i32_0 = arith.constant 0 : i32
    %c0_i32_1 = arith.constant 0 : i32
    return %c0_i32, %c0_i32_0 : i32, i32
  }
  func.func @transform_3(%arg0: i32) -> (i32, i32) {
    %c0_i32 = arith.constant 0 : i32
    %c0_i32_0 = arith.constant 0 : i32
    %c0_i32_1 = arith.constant 0 : i32
    return %c0_i32, %c0_i32_0 : i32, i32
  }
  func.func @transform_4(%arg0: i32) -> (i32, i32) {
    %c0_i32 = arith.constant 0 : i32
    %c0_i32_0 = arith.constant 0 : i32
    %c0_i32_1 = arith.constant 0 : i32
    return %c0_i32, %c0_i32_0 : i32, i32
  }
  func.func @transform_5(%arg0: i32) -> (i32, i32) {
    %c0_i32 = arith.constant 0 : i32
    %c0_i32_0 = arith.constant 0 : i32
    %c0_i32_1 = arith.constant 0 : i32
    return %c0_i32, %c0_i32_0 : i32, i32
  }
  func.func @transform_6(%arg0: i32) -> (i32, i32) {
    %c0_i32 = arith.constant 0 : i32
    %c0_i32_0 = arith.constant 0 : i32
    %c0_i32_1 = arith.constant 0 : i32
    return %c0_i32, %c0_i32_0 : i32, i32
  }
  func.func @transform_7(%arg0: i32) -> (i32, i32) {
    %c0_i32 = arith.constant 0 : i32
    %c0_i32_0 = arith.constant 0 : i32
    %c0_i32_1 = arith.constant 0 : i32
    return %c0_i32, %c0_i32_0 : i32, i32
  }
  func.func @transform_8(%arg0: i32) -> (i32, i32) {
    %c0_i32 = arith.constant 0 : i32
    %c0_i32_0 = arith.constant 0 : i32
    %c0_i32_1 = arith.constant 0 : i32
    return %c0_i32, %c0_i32_0 : i32, i32
  }
  func.func @transform_9(%arg0: i32) -> (i32, i32) {
    %c0_i32 = arith.constant 0 : i32
    %c0_i32_0 = arith.constant 0 : i32
    %c0_i32_1 = arith.constant 0 : i32
    return %c0_i32, %c0_i32_0 : i32, i32
  }
  func.func @transform_10(%arg0: i32) -> (i32, i32, i32) {
    %c0_i32 = arith.constant 0 : i32
    %c0_i32_0 = arith.constant 0 : i32
    %c0_i32_1 = arith.constant 0 : i32
    return %arg0, %c0_i32, %c0_i32_0 : i32, i32, i32
  }
}

</mosaic_0001>

<bundles_post_ra>
// kernel: tpu_custom_call.1
= control target key start
LH: loop header
LB: loop body
LE: loop exit
PB: predicated region body
PF: predicated region fallthrough
CT: control target
= control target key end

     0   :  { %15 = vsyncpa [#allocation3], 0  ;;  %s4054_s0 = inlined_call_operand.vmem [shape: f32[2,64,4], index: 0, kind: input, shape index: {}]   ;;  %s4055_s1 = inlined_call_operand.hbm [shape: f32[384,128], index: 1, kind: input, shape index: {}]   ;;  %s4056_s2 = inlined_call_operand.vmem [shape: f32[1,128], index: 2, kind: input, shape index: {}]   ;;  %s4057_s3 = inlined_call_operand.vmem [shape: f32[128,128], index: 3, kind: input, shape index: {}]   ;;  %s4058_s4 = inlined_call_operand.hbm [shape: f32[384,128], index: 4, kind: input, shape index: {}]   ;;  %s4059_s5 = inlined_call_operand.vmem [shape: f32[1,128], index: 5, kind: input, shape index: {}]   ;;  %s4060_s6 = inlined_call_operand.hbm [shape: f32[128,128], index: 6, kind: input, shape index: {}]   ;;  %s4061_s7 = inlined_call_operand.hbm [shape: f32[384,128], index: 7, kind: input, shape index: {}]   ;;  %s4062_s8 = inlined_call_operand.vmem [shape: f32[1,128], index: 8, kind: input, shape index: {}]   ;;  %s4063_s9 = inlined_call_operand.hbm [shape: f32[128,128], index: 9, kind: input, shape index: {}]   ;;  %s4064_s10 = inlined_call_operand.vmem [shape: f32[2,7,8], index: 10, kind: output, shape index: {}]  }
   0x1   :  { %16 = vsyncpa [#allocation5], 0 }
   0x2   :  { %17 = vsyncpa [#allocation8], 0  ;;  %s3561_s13 = smov 0  }
   0x3 LB: > { %s3567_s14 = sadd.s32 4294967295, %s3495_s13   ;;  %p2339_p0 = scmp.ge.s32.totalorder %s3495_s13, 1  ;;  %s3495_s13 = sphi %s3561_s13, %s23_s13  }
   0x4   : > { %p269_p1 = scmp.lt.s32.totalorder %s3495_s13, 3  ;;  %p4065_p2 = scmp.eq.s32.totalorder %s3567_s14, 0 }
   0x5   : > { %s3497_s16 = smov [#allocation4]   ;;  %s3498_s18 = smov [#allocation7]  }
   0x6   : > { %p3572_p3 = pnand %p2339_p0, %p269_p1  ;;  %s300_s17 = sshll.u32 %s3497_s16, 4  ;;  %s3576_s17 = int_to_ptr.vmem [resolvable:$true] %s300_s17 }
   0x7   : > { %s329_s19 = sshll.u32 %s3498_s18, 4  ;;  %s3499_s21 = smov [#allocation2]   ;;  %s3580_s19 = int_to_ptr.vmem [resolvable:$true] %s329_s19 }
   0x8   : > { %s4067_s15 = scalar_select %p3572_p3, 1, 0 }
   0x9   : > { %p3266_p4 = pneg %p3572_p3  ;;  %s281_s22 = sshll.u32 %s3499_s21, 4  ;;  %s3588_s22 = int_to_ptr.vmem [resolvable:$true] %s281_s22 }
   0xa   : > { %s3500_s23 = smov [#allocation6]   ;;  %s3337_s27 = scalar_lea.hbm %s4058_s4, 6144 }
   0xb   : > { %p3584_p5 = pnand %p4065_p2, %p3266_p4  ;;  %s3590_s24 = sshll.u32 %s3500_s23, 4  ;;  %s317_s24 = int_to_ptr.vmem [resolvable:$true] %s3590_s24 }
   0xc   : > { %p3338_p6 = scmp.ne.s32.totalorder %s4058_s4, %s3337_s27  ;;  %p3344_p10 = scmp.lt.u32.totalorder %s3337_s27, %s4058_s4 }
   0xd   : > { %p3600_p7 = pneg %p3584_p5 }
   0xf   : > { %p3340_p8 = pnand %p3600_p7, %p3338_p6 }
  0x11   : > { %p3341_p9 = pneg %p3340_p8 }
  0x13   : > { %p3346_p11 = pnand %p3344_p10, %p3341_p9 }
  0x15   : > { %3349 = shalt.err (!%p3346_p11)
}
  0x16   : > { %s3350_s16 = scalar_lea.vmem %s3576_s17, 6144  ;;  %p3358_p1 = scmp.lt.s32.totalorder %s3576_s17, %s3576_s17 }
  0x17   : > { %p3351_p12 = scmp.ne.s32.totalorder %s3576_s17, %s3350_s16  ;;  %p3359_p4 = scmp.lt.s32.totalorder %s3350_s16, %s3350_s16 }
  0x19   : > { %p3353_p13 = pnand %p3351_p12, %p3600_p7  ;;  %p3360_p6 = por %p3359_p4, %p3358_p1 }
  0x1b   : > { %p3354_p0 = pneg %p3353_p13 }
  0x1d   : > { %p3361_p8 = pnand %p3360_p6, %p3354_p0 }
  0x1f   : > { %3364 = shalt.err (!%p3361_p8)
}
  0x20   : > { %s3501_s18 = smov 128   ;;  %s3502_s21 = smov 8  }
  0x21   : > { %3272 = dma.hbm_to_vmem [thread:$0]  (!%p3584_p5), %s4058_s4, 6144, %s3576_s17, [#allocation5], %s3501_s18, %s3501_s18, %s3502_s21  }
  0x22   : > { %s3365_s28 = scalar_lea.hbm %s4061_s7, 6144 }
  0x23   : > { %p3366_p9 = scmp.ne.s32.totalorder %s4061_s7, %s3365_s28  ;;  %p3372_p12 = scmp.lt.u32.totalorder %s3365_s28, %s4061_s7 }
  0x25   : > { %p3368_p10 = pnand %p3366_p9, %p3600_p7 }
  0x27   : > { %p3369_p11 = pneg %p3368_p10 }
  0x29   : > { %p3374_p13 = pnand %p3372_p12, %p3369_p11 }
  0x2b   : > { %3377 = shalt.err (!%p3374_p13)
}
  0x2c   : > { %s3378_s17 = scalar_lea.vmem %s3580_s19, 6144  ;;  %p3386_p6 = scmp.lt.s32.totalorder %s3580_s19, %s3580_s19 }
  0x2d   : > { %p3379_p0 = scmp.ne.s32.totalorder %s3580_s19, %s3378_s17  ;;  %p3387_p8 = scmp.lt.s32.totalorder %s3378_s17, %s3378_s17 }
  0x2f   : > { %p3381_p1 = pnand %p3379_p0, %p3600_p7  ;;  %p3388_p9 = por %p3387_p8, %p3386_p6 }
  0x31   : > { %p3382_p4 = pneg %p3381_p1 }
  0x33   : > { %p3389_p10 = pnand %p3388_p9, %p3382_p4 }
  0x35   : > { %3392 = shalt.err (!%p3389_p10)
}
  0x36   : > { %3278 = dma.hbm_to_vmem [thread:$0]  (!%p3584_p5), %s4061_s7, 6144, %s3580_s19, [#allocation8], %s3501_s18, %s3501_s18, %s3502_s21  }
  0x37   : > { %s3393_s28 = scalar_lea.hbm %s4055_s1, 6144 }
  0x38   : > { %p3394_p11 = scmp.ne.s32.totalorder %s4055_s1, %s3393_s28  ;;  %p3400_p0 = scmp.lt.u32.totalorder %s3393_s28, %s4055_s1 }
  0x3a   : > { %p3396_p12 = pnand %p3394_p11, %p3600_p7 }
  0x3c   : > { %p3397_p13 = pneg %p3396_p12 }
  0x3e   : > { %p3402_p1 = pnand %p3400_p0, %p3397_p13 }
  0x40   : > { %3405 = shalt.err (!%p3402_p1)
}
  0x41   : > { %s3406_s19 = scalar_lea.vmem %s3588_s22, 6144  ;;  %p3414_p9 = scmp.lt.s32.totalorder %s3588_s22, %s3588_s22 }
  0x42   : > { %p3407_p4 = scmp.ne.s32.totalorder %s3588_s22, %s3406_s19  ;;  %p3415_p10 = scmp.lt.s32.totalorder %s3406_s19, %s3406_s19 }
  0x44   : > { %p3409_p6 = pnand %p3407_p4, %p3600_p7  ;;  %p3416_p11 = por %p3415_p10, %p3414_p9 }
  0x46   : > { %p3410_p8 = pneg %p3409_p6 }
  0x48   : > { %p3417_p12 = pnand %p3416_p11, %p3410_p8 }
  0x4a   : > { %3420 = shalt.err (!%p3417_p12)
}
  0x4b   : > { %3269 = dma.hbm_to_vmem [thread:$0]  (!%p3584_p5), %s4055_s1, 6144, %s3588_s22, [#allocation3], %s3501_s18, %s3501_s18, %s3502_s21  }
  0x4c   : > { %s3421_s27 = scalar_lea.hbm %s4060_s6, 2048 }
  0x4d   : > { %p3422_p13 = scmp.ne.s32.totalorder %s4060_s6, %s3421_s27  ;;  %p3428_p4 = scmp.lt.u32.totalorder %s3421_s27, %s4060_s6 }
  0x4f   : > { %p3424_p0 = pnand %p3422_p13, %p3600_p7 }
  0x51   : > { %p3425_p1 = pneg %p3424_p0 }
  0x53   : > { %p3430_p6 = pnand %p3428_p4, %p3425_p1 }
  0x55   : > { %3433 = shalt.err (!%p3430_p6)
}
  0x56   : > { %s3434_s16 = scalar_lea.vmem %s317_s24, 2048  ;;  %p3442_p11 = scmp.lt.s32.totalorder %s317_s24, %s317_s24 }
  0x57   : > { %p3435_p8 = scmp.ne.s32.totalorder %s317_s24, %s3434_s16  ;;  %p3443_p12 = scmp.lt.s32.totalorder %s3434_s16, %s3434_s16 }
  0x59   : > { %p3437_p9 = pnand %p3435_p8, %p3600_p7  ;;  %p3444_p2 = por %p3443_p12, %p3442_p11 }
  0x5b   : > { %p3438_p10 = pneg %p3437_p9 }
  0x5d   : > { %p3445_p3 = pnand %p3444_p2, %p3438_p10 }
  0x5f   : > { %3448 = shalt.err (!%p3445_p3)
}
  0x60   : > { %3275 = dma.hbm_to_vmem [thread:$0]  (!%p3584_p5), %s4060_s6, 2048, %s317_s24, [#allocation5], %s3501_s18, %s3501_s18, %s3502_s21  }
  0x61   : > { %s3503_s17 = smov [#allocation9]   ;;  %s3449_s27 = scalar_lea.hbm %s4063_s9, 2048 }
  0x62   : > { %s345_s23 = sshll.u32 %s3503_s17, 4  ;;  %p3450_p2 = scmp.ne.s32.totalorder %s4063_s9, %s3449_s27  ;;  %s346_s23 = int_to_ptr.vmem [resolvable:$true] %s345_s23 }
  0x63   : > { %p3456_p0 = scmp.lt.u32.totalorder %s3449_s27, %s4063_s9 }
  0x64   : > { %p3452_p3 = pnand %p3450_p2, %p3600_p7 }
  0x66   : > { %p3453_p13 = pneg %p3452_p3 }
  0x68   : > { %p3458_p1 = pnand %p3456_p0, %p3453_p13 }
  0x6a   : > { %3461 = shalt.err (!%p3458_p1)
}
  0x6b   : > { %s3462_s24 = scalar_lea.vmem %s346_s23, 2048  ;;  %p3470_p9 = scmp.lt.s32.totalorder %s346_s23, %s346_s23 }
  0x6c   : > { %p3463_p4 = scmp.ne.s32.totalorder %s346_s23, %s3462_s24  ;;  %p3471_p10 = scmp.lt.s32.totalorder %s3462_s24, %s3462_s24 }
  0x6e   : > { %p3465_p6 = pnand %p3463_p4, %p3600_p7  ;;  %p3472_p11 = por %p3471_p10, %p3470_p9 }
  0x70   : > { %p3466_p8 = pneg %p3465_p6 }
  0x72   : > { %p3473_p12 = pnand %p3472_p11, %p3466_p8 }
  0x74   : > { %3476 = shalt.err (!%p3473_p12)
}
  0x75   : > { %3281 = dma.hbm_to_vmem [thread:$0]  (!%p3584_p5), %s4063_s9, 2048, %s346_s23, [#allocation8], %s3501_s18, %s3501_s18, %s3502_s21  }
  0x76   : > { %p4070_p2 = scmp.ne.s32.totalorder %s4067_s15, 0 }
  0x77   : > { %p4071_p7 = scmp.eq.s32.totalorder (!%p4070_p2), %s3567_s14, 0 }
  0x78   : > { %369 = sbr.rel (%p4070_p2) target bundleno = 2337 (0x921), region = 60 }
  0x7f   : > { %3482 = dma.done.wait (%p4071_p7), [#allocation3], 6144   ;;  %p4072_p3 = pmov %p4071_p7 }
  0x81   : > { %3484 = vsyncadd (%p4072_p3), [#allocation3], 4294961152  ;;  %p4073_p13 = pmov %p4072_p3 }
  0x82   : > { %p4074_p0 = pmov %p4072_p3 }
  0x83   : > { %3486 = dma.done.wait (%p4073_p13), [#allocation5], 8192  }
  0x84   : > { %3488 = vsyncadd (%p4074_p0), [#allocation5], 4294959104  ;;  %p4075_p1 = pmov %p4074_p0 }
  0x85   : > { %p4076_p5 = pmov %p4074_p0 }
  0x86   : > { %3490 = dma.done.wait (%p4075_p1), [#allocation8], 8192  }
  0x87   : > { %3492 = vsyncadd (%p4076_p5), [#allocation8], 4294959104  ;;  %v464_v0 = vld [vmem:[#allocation2 + $0x80] sm:$0xff]  ;;  %v465_v1 = vld [vmem:[#allocation2 + $0x88] sm:$0xff]  ;;  %p422_p4 = scmp.lt.s32.totalorder %s3567_s14, 1  ;;  %vm439_vm0 = vcmask 31744  }
  0x88   : > { %v448_v2 = vld [vmem:[#allocation2] sm:$0xff]  ;;  %v2924_v3 = vpack.c.bf16 %v465_v1, %v464_v0  ;;  %v449_v4 = vld [vmem:[#allocation2 + $0x8] sm:$0xff]  ;;  %v466_v5 = vld [vmem:[#allocation2 + $0x90] sm:$0xff]  ;;  %vm521_vm1 = vcmask 1046528   ;;  %vm545_vm2 = vcmask 1045504   ;;  %vm3505_vm3 = vmmov 1  }
  0x89   : > { %v467_v6 = vld [vmem:[#allocation2 + $0x98] sm:$0xff]  ;;  %v2926_v7 = vpack.c.bf16 %v449_v4, %v448_v2  ;;  %v480_v9 = vld [vmem:[#allocation2 + $0x100] sm:$0xff]  ;;  %v481_v10 = vld [vmem:[#allocation2 + $0x108] sm:$0xff]  ;;  %s4080_s14 = smov (!%p422_p4, %s3567_s14), 1  ;;  %vm973_vm6 = vcmask 506880   ;;  %vm1122_vm15 = vcmask 1040384  }
  0x8a   : > { %v2928_v8 = vpack.c.bf16 %v467_v6, %v466_v5  ;;  %v450_v11 = vld [vmem:[#allocation2 + $0x10] sm:$0xff]  ;;  %2925 = vmatprep.subr.bf16.mxu0 %v2924_v3  ;;  %v2956_v12 = vpack.c.bf16 %v481_v10, %v480_v9  ;;  %v451_v13 = vld [vmem:[#allocation2 + $0x18] sm:$0xff]  ;;  %v468_v14 = vld [vmem:[#allocation2 + $0xa0] sm:$0xff]  ;;  %s2427_s15 = sshll.u32 %s4080_s14, 6  ;;  %s2354_s17 = sshll.u32 %s4080_s14, 3 }
  0x8b   : > { %v469_v15 = vld [vmem:[#allocation2 + $0xa8] sm:$0xff]  ;;  %2927 = vmatpush3.bf16.msra.mxu0 %v2926_v7  ;;  %v2930_v16 = vpack.c.bf16 %v451_v13, %v450_v11  ;;  %v482_v17 = vld [vmem:[#allocation2 + $0x110] sm:$0xff]  ;;  %v483_v18 = vld [vmem:[#allocation2 + $0x118] sm:$0xff]  ;;  %s3743_s18 = scalar_lea.vmem %s4054_s0, %s2427_s15  ;;  %s430_s26 = scalar_lea.vmem %s4064_s10, %s2354_s17 }
  0x8c   : > { %2929 = vmatprep.subr.bf16.mxu0 %v2928_v8  ;;  %2957 = vmatprep.subr.bf16.mxu1 %v2956_v12  ;;  %v2932_v19 = vpack.c.bf16 %v469_v15, %v468_v14  ;;  %v2960_v20 = vpack.c.bf16 %v483_v18, %v482_v17  ;;  %v452_v21 = vld [vmem:[#allocation2 + $0x20] sm:$0xff]  ;;  %v453_v22 = vld [vmem:[#allocation2 + $0x28] sm:$0xff]  ;;  %v470_v23 = vld [vmem:[#allocation2 + $0xb0] sm:$0xff] }
  0x8d   : > { %2959 = vmatpush3.bf16.msra.mxu1 %v2956_v12  ;;  %v471_v24 = vld [vmem:[#allocation2 + $0xb8] sm:$0xff]  ;;  %v484_v25 = vld [vmem:[#allocation2 + $0x120] sm:$0xff]  ;;  %v485_v26 = vld [vmem:[#allocation2 + $0x128] sm:$0xff]  ;;  %v2934_v28 = vpack.c.bf16 %v453_v22, %v452_v21 }
  0x8e   : > { %2961 = vmatprep.subr.bf16.mxu1 %v2960_v20  ;;  %v2964_v27 = vpack.c.bf16 %v485_v26, %v484_v25  ;;  %v486_v29 = vld [vmem:[#allocation2 + $0x130] sm:$0xff]  ;;  %v487_v30 = vld [vmem:[#allocation2 + $0x138] sm:$0xff]  ;;  %v2936_v31 = vpack.c.bf16 %v471_v24, %v470_v23  ;;  %v472_v34 = vld [vmem:[#allocation2 + $0xc0] sm:$0xff] }
  0x8f   : > { %2931 = vmatpush3.bf16.msra.mxu0 %v2930_v16  ;;  %v454_v32 = vld [vmem:[#allocation2 + $0x30] sm:$0xff]  ;;  %v455_v33 = vld [vmem:[#allocation2 + $0x38] sm:$0xff]  ;;  %v473_v35 = vld [vmem:[#allocation2 + $0xc8] sm:$0xff]  ;;  %v2968_v36 = vpack.c.bf16 %v487_v30, %v486_v29 }
  0x90   : > { %2933 = vmatprep.subr.bf16.mxu0 %v2932_v19  ;;  %v2938_v37 = vpack.c.bf16 %v455_v33, %v454_v32  ;;  %v488_v38 = vld [vmem:[#allocation2 + $0x140] sm:$0xff]  ;;  %v489_v39 = vld [vmem:[#allocation2 + $0x148] sm:$0xff]  ;;  %v2940_v40 = vpack.c.bf16 %v473_v35, %v472_v34  ;;  %v474_v43 = vld [vmem:[#allocation2 + $0xd0] sm:$0xff] }
  0x91   : > { %2963 = vmatpush3.bf16.msra.mxu1 %v2960_v20  ;;  %v456_v41 = vld [vmem:[#allocation2 + $0x40] sm:$0xff]  ;;  %v457_v42 = vld [vmem:[#allocation2 + $0x48] sm:$0xff]  ;;  %v475_v44 = vld [vmem:[#allocation2 + $0xd8] sm:$0xff]  ;;  %v2972_v45 = vpack.c.bf16 %v489_v39, %v488_v38 }
  0x92   : > { %2965 = vmatprep.subr.bf16.mxu1 %v2964_v27  ;;  %v3746_v46 = vld [vmem:[%s3743_s18] sm:$0xff]  ;;  %v3749_v47 = vld [vmem:[%s3743_s18 + $0x8] sm:$0xff]  ;;  %v2942_v48 = vpack.c.bf16 %v457_v42, %v456_v41  ;;  %v490_v49 = vld [vmem:[#allocation2 + $0x150] sm:$0xff]  ;;  %v2944_v53 = vpack.c.bf16 %v475_v44, %v474_v43 }
  0x93   : > { %2935 = vmatpush3.bf16.msra.mxu0 %v2934_v28  ;;  %v491_v50 = vld [vmem:[#allocation2 + $0x158] sm:$0xff]  ;;  %v440_v51 = vsel %vm439_vm0, %v3746_v46, 0.0  ;;  %v3755_v52 = vsel %vm439_vm0, %v3749_v47, 0.0  ;;  %v458_v54 = vld [vmem:[#allocation2 + $0x50] sm:$0xff]  ;;  %v476_v58 = vld [vmem:[#allocation2 + $0xe0] sm:$0xff] }
  0x94   : > { %2937 = vmatprep.subr.bf16.mxu0 %v2936_v31  ;;  %v459_v55 = vld [vmem:[#allocation2 + $0x58] sm:$0xff]  ;;  %v522_v56 = vrot.slane %v440_v51, 1  ;;  %v523_v57 = vrot.slane %v3755_v52, 1  ;;  %v477_v59 = vld [vmem:[#allocation2 + $0xe8] sm:$0xff]  ;;  %v546_v60 = vrot.slane %v440_v51, 2  ;;  %v547_v61 = vrot.slane %v3755_v52, 2  ;;  %vm3880_vm4 = vmpackc.low %vm545_vm2, %vm3505_vm3 }
  0x95   : > { %2967 = vmatpush3.bf16.msra.mxu1 %v2964_v27  ;;  %v2976_v62 = vpack.c.bf16 %v491_v50, %v490_v49  ;;  %v2946_v0 = vpack.c.bf16 %v459_v55, %v458_v54  ;;  %v492_v1 = vld [vmem:[#allocation2 + $0x160] sm:$0xff]  ;;  %v493_v2 = vld [vmem:[#allocation2 + $0x168] sm:$0xff]  ;;  %v2948_v4 = vpack.c.bf16 %v477_v59, %v476_v58  ;;  %v478_v7 = vld [vmem:[#allocation2 + $0xf0] sm:$0xff] }
  0x96   : > { %2969 = vmatprep.subr.bf16.mxu1 %v2968_v36  ;;  %v524_v63 = vsel %vm521_vm1, %v522_v56, %v523_v57  ;;  %v548_v3 = vsel %vm545_vm2, %v546_v60, %v547_v61  ;;  %v460_v5 = vld [vmem:[#allocation2 + $0x60] sm:$0xff]  ;;  %v461_v6 = vld [vmem:[#allocation2 + $0x68] sm:$0xff]  ;;  %v479_v8 = vld [vmem:[#allocation2 + $0xf8] sm:$0xff]  ;;  %v2980_v9 = vpack.c.bf16 %v493_v2, %v492_v1 }
  0x97   : > { %2939 = vmatpush3.bf16.msra.mxu0 %v2938_v37  ;;  %639 = vmatprep.mubr.f32.mxu0 %v524_v63  ;;  %v3762_v10 = vld [vmem:[%s3743_s18 + $0x10] sm:$0xff]  ;;  %v2950_v11 = vpack.c.bf16 %v461_v6, %v460_v5  ;;  %v495_v13 = vld [vmem:[#allocation2 + $0x178] sm:$0xff]  ;;  %v2952_v14 = vpack.c.bf16 %v479_v8, %v478_v7  ;;  %v497_v18 = vld [vmem:[%s4057_s3] sm:$0xff] }
  0x98   : > { %2941 = vmatprep.subr.bf16.mxu0 %v2940_v40  ;;  %2722 = vmatprep.mubr.f32.mxu1 %v548_v3  ;;  %v494_v12 = vld [vmem:[#allocation2 + $0x170] sm:$0xff]  ;;  %v463_v16 = vld [vmem:[#allocation2 + $0x78] sm:$0xff]  ;;  %v442_v17 = vsel %vm439_vm0, %v3762_v10, 0.0  ;;  %v498_v19 = vld [vmem:[%s4057_s3 + $0x8] sm:$0xff] }
  0x99   : > { %2971 = vmatpush3.bf16.msra.mxu1 %v2968_v36  ;;  %v462_v15 = vld [vmem:[#allocation2 + $0x70] sm:$0xff]  ;;  %v2984_v20 = vpack.c.bf16 %v495_v13, %v494_v12  ;;  %v3773_v21 = vld [vmem:[%s3743_s18 + $0x18] sm:$0xff]  ;;  %v3776_v23 = vld [vmem:[%s3743_s18 + $0x20] sm:$0xff]  ;;  %v525_v24 = vrot.slane %v442_v17, 1  ;;  %v2988_v25 = vpack.c.bf16 %v498_v19, %v497_v18  ;;  %v549_v26 = vrot.slane %v442_v17, 2 }
  0x9a   : > { %2973 = vmatprep.subr.bf16.mxu1 %v2972_v45  ;;  %v2954_v22 = vpack.c.bf16 %v463_v16, %v462_v15  ;;  %v443_v27 = vsel %vm439_vm0, %v3773_v21, 0.0  ;;  %v499_v28 = vld [vmem:[%s4057_s3 + $0x10] sm:$0xff]  ;;  %v500_v29 = vld [vmem:[%s4057_s3 + $0x18] sm:$0xff]  ;;  %v444_v30 = vsel %vm439_vm0, %v3776_v23, 0.0  ;;  %v3789_v32 = vld [vmem:[%s3743_s18 + $0x28] sm:$0xff] }
  0x9b   : > { %2943 = vmatpush3.bf16.msra.mxu0 %v2942_v48  ;;  %v551_v31 = vrot.slane %v443_v27, 2  ;;  %v3792_v33 = vld [vmem:[%s3743_s18 + $0x30] sm:$0xff]  ;;  %v526_v34 = vsel %vm521_vm1, %v523_v57, %v525_v24  ;;  %v527_v35 = vrot.slane %v443_v27, 1  ;;  %v2992_v36 = vpack.c.bf16 %v500_v29, %v499_v28  ;;  %v501_v40 = vld [vmem:[%s4057_s3 + $0x20] sm:$0xff]  ;;  %v502_v41 = vld [vmem:[%s4057_s3 + $0x28] sm:$0xff] }
  0x9c   : > { %2945 = vmatprep.subr.bf16.mxu0 %v2944_v53  ;;  %v550_v37 = vsel %vm545_vm2, %v547_v61, %v549_v26  ;;  %v553_v38 = vrot.slane %v444_v30, 2  ;;  %v445_v39 = vsel %vm439_vm0, %v3789_v32, 0.0  ;;  %v446_v43 = vsel %vm439_vm0, %v3792_v33, 0.0  ;;  %v503_v53 = vld [vmem:[%s4057_s3 + $0x30] sm:$0xff]  ;;  %v504_v54 = vld [vmem:[%s4057_s3 + $0x38] sm:$0xff]  ;;  %v505_v61 = vld [vmem:[%s4057_s3 + $0x40] sm:$0xff] }
  0x9d   : > { %2975 = vmatpush3.bf16.msra.mxu1 %v2972_v45  ;;  %v552_v42 = vsel %vm545_vm2, %v549_v26, %v551_v31  ;;  %v555_v44 = vrot.slane %v445_v39, 2  ;;  %v438_v45 = vld [vmem:[%s3743_s18 + $0x38] sm:$0xff]  ;;  %v528_v48 = vsel %vm521_vm1, %v525_v24, %v527_v35  ;;  %v529_v49 = vrot.slane %v444_v30, 1  ;;  %v507_v5 = vld [vmem:[%s4057_s3 + $0x50] sm:$0xff]  ;;  %v509_v8 = vld [vmem:[%s4057_s3 + $0x60] sm:$0xff] }
  0x9e   : > { %2977 = vmatprep.subr.bf16.mxu1 %v2976_v62  ;;  %v2996_v50 = vpack.c.bf16 %v502_v41, %v501_v40  ;;  %v554_v51 = vsel %vm545_vm2, %v551_v31, %v553_v38  ;;  %v557_v52 = vrot.slane %v446_v43, 2  ;;  %v531_v58 = vrot.slane %v445_v39, 1  ;;  %v508_v6 = vld [vmem:[%s4057_s3 + $0x58] sm:$0xff]  ;;  %v2355_v16 = vld [vmem:[%s4056_s2] ss:$0 sm:$0xff] }
  0x9f   : > { %2947 = vmatpush3.bf16.msra.mxu0 %v2946_v0  ;;  %v556_v55 = vsel %vm545_vm2, %v553_v38, %v555_v44  ;;  %v530_v57 = vsel %vm521_vm1, %v527_v35, %v529_v49  ;;  %v3000_v59 = vpack.c.bf16 %v504_v54, %v503_v53  ;;  %v533_v0 = vrot.slane %v446_v43, 1  ;;  %v512_v12 = vld [vmem:[%s4057_s3 + $0x78] sm:$0xff] }
  0xa0   : > { %2949 = vmatprep.subr.bf16.mxu0 %v2948_v4  ;;  %v558_v60 = vsel %vm545_vm2, %v555_v44, %v557_v52  ;;  %v532_v63 = vsel %vm521_vm1, %v529_v49, %v531_v58  ;;  %v3008_v7 = vpack.c.bf16 %v508_v6, %v507_v5 }
  0xa1   : > { %2979 = vmatpush3.bf16.msra.mxu1 %v2976_v62  ;;  %v534_v2 = vsel %vm521_vm1, %v531_v58, %v533_v0 }
  0xa2   : > { %2981 = vmatprep.subr.bf16.mxu1 %v2980_v9 }
  0xa3   : > { %2951 = vmatpush3.bf16.msra.mxu0 %v2950_v11  ;;  %v511_v11 = vld [vmem:[%s4057_s3 + $0x70] sm:$0xff] }
  0xa4   : > { %2953 = vmatprep.subr.bf16.mxu0 %v2952_v14  ;;  %v3016_v13 = vpack.c.bf16 %v512_v12, %v511_v11 }
  0xa5   : > { %2983 = vmatpush3.bf16.msra.mxu1 %v2980_v9  ;;  %v510_v9 = vld [vmem:[%s4057_s3 + $0x68] sm:$0xff] }
  0xa6   : > { %2985 = vmatprep.subr.bf16.mxu1 %v2984_v20 }
  0xa7   : > { %2955 = vmatpush3.bf16.msra.mxu0 %v2954_v22 }
  0xa8   : > { %2989 = vmatprep.subr.bf16.mxu0 %v2988_v25 }
  0xa9   : > { %2987 = vmatpush3.bf16.msra.mxu1 %v2984_v20 }
  0xaa   : > { %2356 = vmatmul.mubr.msk.f32.vlgmr.msra.gmra.mrb[0].mxu0 %vm439_vm0, %v3746_v46  ;;  %v447_v46 = vsel %vm439_vm0, %v438_v45, 0.0 }
  0xab   : > { %644 = vmatprep.mubr.f32.mxu0 %v526_v34  ;;  %2991 = vmatpush3.bf16.msra.mxu0 %v2988_v25  ;;  %v559_v56 = vrot.slane %v447_v46, 2  ;;  %v535_v3 = vrot.slane %v447_v46, 1 }
  0xac   : > { %2723 = vmatmul.mubr.f32.vlgmr.msra.gmra.mrb[0].mxu1 %v550_v37  ;;  %2993 = vmatprep.subr.bf16.mxu0 %v2992_v36 }
  0xad   : > { %2725 = vmatprep.mubr.f32.mxu1 %v552_v42  ;;  %v560_v62 = vsel %vm545_vm2, %v557_v52, %v559_v56  ;;  %v536_v4 = vsel %vm521_vm1, %v533_v0, %v535_v3 }
  0xae   : > { %2357 = vmatmul.mubr.msk.f32.gmra.mrb[2].mxu0 %vm439_vm0, %v3749_v47  ;;  %v506_v47 = vld [vmem:[%s4057_s3 + $0x48] sm:$0xff] }
  0xaf   : > { %649 = vmatprep.mubr.f32.mxu0 %v528_v48  ;;  %2995 = vmatpush3.bf16.msra.mxu0 %v2992_v36  ;;  %v3004_v1 = vpack.c.bf16 %v506_v47, %v505_v61 }
  0xb0   : > { %2726 = vmatmul.mubr.f32.gmra.mrb[2].mxu1 %v554_v51  ;;  %2997 = vmatprep.subr.bf16.mxu0 %v2996_v50 }
  0xb1   : > { %2728 = vmatprep.mubr.f32.mxu1 %v556_v55 }
  0xb2   : > { %2358 = vmatmul.mubr.msk.f32.gmra.mrb[4].mxu0 %vm439_vm0, %v3762_v10  ;;  %v3012_v10 = vpack.c.bf16 %v510_v9, %v509_v8 }
  0xb3   : > { %654 = vmatprep.mubr.f32.mxu0 %v530_v57  ;;  %2999 = vmatpush3.bf16.msra.mxu0 %v2996_v50 }
  0xb4   : > { %2729 = vmatmul.mubr.f32.gmra.mrb[4].mxu1 %v558_v60  ;;  %3001 = vmatprep.subr.bf16.mxu0 %v3000_v59 }
  0xb5   : > { %2731 = vmatprep.mubr.f32.mxu1 %v560_v62 }
  0xb6   : > { %2359 = vmatmul.mubr.msk.f32.gmra.mrb[6].mxu0 %vm439_vm0, %v3773_v21 }
  0xb7   : > { %659 = vmatprep.mubr.f32.mxu0 %v532_v63  ;;  %3003 = vmatpush3.bf16.msra.mxu0 %v3000_v59 }
  0xb8   : > { %2732 = vmatmul.mubr.f32.gmra.mrb[6].mxu1 %v559_v56  ;;  %3005 = vmatprep.subr.bf16.mxu0 %v3004_v1 }
  0xba   : > { %2360 = vmatmul.mubr.msk.f32.gmra.mrb[8].mxu0 %vm439_vm0, %v3776_v23 }
  0xbb   : > { %664 = vmatprep.mubr.f32.mxu0 %v534_v2  ;;  %3007 = vmatpush3.bf16.msra.mxu0 %v3004_v1 }
  0xbc   : > { %3009 = vmatprep.subr.bf16.mxu0 %v3008_v7 }
  0xbe   : > { %2361 = vmatmul.mubr.msk.f32.gmra.mrb[10].mxu0 %vm439_vm0, %v3789_v32 }
  0xbf   : > { %669 = vmatprep.mubr.f32.mxu0 %v536_v4  ;;  %3011 = vmatpush3.bf16.msra.mxu0 %v3008_v7 }
  0xc0   : > { %3013 = vmatprep.subr.bf16.mxu0 %v3012_v10 }
  0xc2   : > { %2362 = vmatmul.mubr.msk.f32.gmra.mrb[12].mxu0 %vm439_vm0, %v3792_v33 }
  0xc3   : > { %674 = vmatprep.mubr.f32.mxu0 %v535_v3  ;;  %3015 = vmatpush3.bf16.msra.mxu0 %v3012_v10  ;;  %v3504_v3 = vmov 0.0   ;;  %v890_v10 = vlaneseq }
  0xc4   : > { %3017 = vmatprep.subr.bf16.mxu0 %v3016_v13  ;;  %1068 = vmatprep.mubr.f32.mxu1 %v3504_v3 }
  0xc5   : > { %v3867_v12 = vshrl.u32 %v890_v10, 7 }
  0xc6   : > { %2363 = vmatmul.mubr.msk.f32.gmra.mrb[14].mxu0 %vm439_vm0, %v438_v45 }
  0xc7   : > { %3019 = vmatpush3.bf16.msra.mxu0 %v3016_v13 }
 0x17d   : > { %v2460_v14 = vpop.f32.mrb[0].mxu0 }
 0x17e   : > { %v2461_v15 = vpop.f32.mrb[1].mxu0 }
 0x17f   : > { %v2462_v17 = vadd.f32 %v2461_v15, %v2460_v14  ;;  %v2724_v18 = vpop.f32.mrb[0].mxu1  ;;  %v3870_v15 = vadd.s32 24, %v3867_v12 }
 0x180   : > { %v746_v19 = vpop.f32.mrb[1].mxu1 }
 0x181   : > { %v2463_v20 = vpop.f32.mrb[2].mxu0  ;;  %v642_v21 = vadd.f32 %v2462_v17, %v2355_v16  ;;  %v3875_v17 = vand.u32 127, %v890_v10  ;;  %vm904_vm8 = vcmp.lt.s32.totalorder %v3870_v15, 31  ;;  %v1231_v10 = vld [vmem:[#allocation4 + $0xa0] sm:$0xff]  ;;  %vm1497_vm0 = vcmp.lt.s32.totalorder %v3870_v15, 29 }
 0x182   : > { %v2464_v22 = vpop.f32.mrb[3].mxu0 }
 0x183   : > { %v2465_v23 = vadd.f32 %v2464_v22, %v2463_v20  ;;  %v747_v24 = vadd.f32 %v746_v19, %v642_v21  ;;  %v2727_v25 = vpop.f32.mrb[2].mxu1  ;;  %v2367_v19 = vadd.s32 4294967265, %v3870_v15 }
 0x184   : > { %v756_v26 = vpop.f32.mrb[3].mxu1 }
 0x185   : > { %v647_v27 = vadd.f32 %v2465_v23, %v2355_v16  ;;  %v2466_v28 = vpop.f32.mrb[4].mxu0  ;;  %2766 = vmatprep.mubr.f32.mxu0 %v747_v24 }
 0x186   : > { %v2467_v29 = vpop.f32.mrb[5].mxu0 }
 0x187   : > { %v752_v30 = vadd.f32 %v2724_v18, %v647_v27  ;;  %v2468_v31 = vadd.f32 %v2467_v29, %v2466_v28  ;;  %v2730_v32 = vpop.f32.mrb[4].mxu1  ;;  %v909_v18 = vmul.u32 2, %v3867_v12  ;;  %v895_v27 = vadd.s32 32, %v3867_v12 }
 0x188   : > { %v766_v33 = vpop.f32.mrb[5].mxu1 }
 0x189   : > { %v3022_v34 = vpack.c.bf16 %v752_v30, %v747_v24  ;;  %v2469_v35 = vpop.f32.mrb[6].mxu0  ;;  %2767 = vmatmul.mubr.f32.vlgmr.msra.gmra.mrb[16].mxu0 %v752_v30  ;;  %v652_v36 = vadd.f32 %v2468_v31, %v2355_v16  ;;  %v3886_v24 = vadd.s32 16, %v3867_v12  ;;  %vm949_vm5 = vcmp.eq.s32.totalorder %v3875_v17, %v909_v18 }
 0x18a   : > { %v2470_v37 = vpop.f32.mrb[7].mxu0  ;;  %v3897_v28 = vsel %vm949_vm5, 1.0, %v3504_v3  ;;  %v912_v30 = vmul.u32 2, %v3870_v15  ;;  %vm1619_vm5 = vcmask 244736  }
 0x18b   : > { %v2471_v38 = vadd.f32 %v2470_v37, %v2469_v35  ;;  %v757_v39 = vadd.f32 %v756_v26, %v652_v36  ;;  %v2733_v40 = vpop.f32.mrb[6].mxu1  ;;  %v928_v26 = vmul.u32 2, %v2367_v19  ;;  %v911_v29 = vmul.u32 2, %v3886_v24  ;;  %v1216_v19 = vld [vmem:[#allocation4 + $0x28] sm:$0xff] }
 0x18c   : > { %v776_v41 = vpop.f32.mrb[7].mxu1 }
 0x18d   : > { %v657_v42 = vadd.f32 %v2471_v38, %v2355_v16  ;;  %v2472_v43 = vpop.f32.mrb[8].mxu0  ;;  %2769 = vmatprep.mubr.f32.mxu0 %v757_v39  ;;  %v936_v31 = vadd.s32 1, %v928_v26  ;;  %vm951_vm9 = vcmp.eq.s32.totalorder %v3875_v17, %v911_v29  ;;  %v897_v38 = vadd.s32 48, %v3867_v12  ;;  %v1234_v29 = vld [vmem:[#allocation4 + $0xb8] sm:$0xff] }
 0x18e   : > { %v2473_v44 = vpop.f32.mrb[9].mxu0 }
 0x18f   : > { %v762_v45 = vadd.f32 %v2727_v25, %v657_v42  ;;  %v2474_v48 = vadd.f32 %v2473_v44, %v2472_v43  ;;  %v944_v35 = vsel %vm904_vm8, %v912_v30, %v936_v31  ;;  %v2370_v42 = vadd.s32 4294967265, %v897_v38  ;;  %v1217_v31 = vld [vmem:[#allocation4 + $0x30] sm:$0xff]  ;;  %v1236_v38 = vld [vmem:[#allocation4 + $0xc8] sm:$0xff] }
 0x190   : > { %vm952_vm10 = vcmp.eq.s32.totalorder %v3875_v17, %v944_v35  ;;  %v898_v43 = vadd.s32 56, %v3867_v12  ;;  %v1250_v35 = vld [vmem:[#allocation4 + $0x138] sm:$0xff] }
 0x191   : > { %v3026_v49 = vpack.c.bf16 %v762_v45, %v757_v39  ;;  %v2475_v50 = vpop.f32.mrb[10].mxu0  ;;  %2770 = vmatmul.mubr.f32.gmra.mrb[18].mxu0 %v762_v45  ;;  %v662_v51 = vadd.f32 %v2474_v48, %v2355_v16  ;;  %v2374_v39 = vsel %vm951_vm9, 1.0, %v3504_v3  ;;  %v2375_v44 = vsel %vm952_vm10, 1.0, %v3504_v3 }
 0x192   : > { %v2476_v52 = vpop.f32.mrb[11].mxu0  ;;  %v931_v48 = vmul.u32 2, %v2370_v42  ;;  %vm2114_vm10 = vcmask 113664  }
 0x193   : > { %v2477_v46 = vadd.f32 %v2476_v52, %v2475_v50  ;;  %v767_v53 = vadd.f32 %v766_v33, %v662_v51  ;;  %v896_v33 = vadd.s32 40, %v3867_v12 }
 0x194   : > { %v939_v51 = vadd.s32 1, %v931_v48 }
 0x195   : > { %v667_v54 = vadd.f32 %v2477_v46, %v2355_v16  ;;  %v2478_v55 = vpop.f32.mrb[12].mxu0  ;;  %2772 = vmatprep.mubr.f32.mxu0 %v767_v53  ;;  %v2369_v37 = vadd.s32 4294967265, %v896_v33 }
 0x196   : > { %v2479_v56 = vpop.f32.mrb[13].mxu0  ;;  %vm955_vm13 = vcmp.eq.s32.totalorder %v3875_v17, %v939_v51  ;;  %v1222_v51 = vld [vmem:[#allocation4 + $0x58] sm:$0xff] }
 0x197   : > { %v772_v57 = vadd.f32 %v2730_v32, %v667_v54  ;;  %v2480_v58 = vadd.f32 %v2479_v56, %v2478_v55  ;;  %v2368_v32 = vadd.s32 4294967265, %v895_v27  ;;  %v2378_v54 = vsel %vm955_vm13, 1.0, %v3504_v3  ;;  %v1227_v56 = vld [vmem:[#allocation4 + $0x80] sm:$0xff]  ;;  %v1233_v27 = vld [vmem:[#allocation4 + $0xb0] sm:$0xff] }
 0x198   : > { %v3050_v30 = vpack.c.bf16 %v1234_v29, %v1233_v27 }
 0x199   : > { %v3030_v59 = vpack.c.bf16 %v772_v57, %v767_v53  ;;  %v2481_v60 = vpop.f32.mrb[14].mxu0  ;;  %2773 = vmatmul.mubr.f32.gmra.mrb[20].mxu0 %v772_v57  ;;  %v672_v61 = vadd.f32 %v2480_v58, %v2355_v16  ;;  %v929_v36 = vmul.u32 2, %v2368_v32  ;;  %v1228_v57 = vld [vmem:[#allocation4 + $0x88] sm:$0xff]  ;;  %v1218_v32 = vld [vmem:[#allocation4 + $0x38] sm:$0xff] }
 0x19a   : > { %v2482_v47 = vpop.f32.mrb[15].mxu0  ;;  %v3038_v58 = vpack.c.bf16 %v1228_v57, %v1227_v56  ;;  %v3052_v33 = vpack.c.bf16 %v1218_v32, %v1217_v31 }
 0x19b   : > { %v2483_v62 = vadd.f32 %v2482_v47, %v2481_v60  ;;  %v777_v63 = vadd.f32 %v776_v41, %v672_v61  ;;  %v930_v41 = vmul.u32 2, %v2369_v37  ;;  %v1212_v60 = vld [vmem:[#allocation4 + $0x8] sm:$0xff]  ;;  %v1243_v47 = vld [vmem:[#allocation4 + $0x100] sm:$0xff] }
 0x19d   : > { %v677_v0 = vadd.f32 %v2483_v62, %v2355_v16  ;;  %2775 = vmatprep.mubr.f32.mxu0 %v777_v63  ;;  %v3873_v16 = vadd.s32 8, %v3867_v12  ;;  %v938_v45 = vadd.s32 1, %v930_v41  ;;  %v1244_v62 = vld [vmem:[#allocation4 + $0x108] sm:$0xff] }
 0x19f   : > { %v782_v1 = vadd.f32 %v2733_v40, %v677_v0  ;;  %v910_v23 = vmul.u32 2, %v3873_v16  ;;  %v937_v40 = vadd.s32 1, %v929_v36  ;;  %vm954_vm12 = vcmp.eq.s32.totalorder %v3875_v17, %v938_v45  ;;  %v1229_v0 = vld [vmem:[#allocation4 + $0x90] sm:$0xff]  ;;  %v1235_v36 = vld [vmem:[#allocation4 + $0xc0] sm:$0xff] }
 0x1a0   : > { %v2377_v46 = vsel %vm954_vm12, 1.0, %v3504_v3  ;;  %v3054_v41 = vpack.c.bf16 %v1236_v38, %v1235_v36  ;;  %v1237_v45 = vld [vmem:[#allocation4 + $0xd0] sm:$0xff]  ;;  %vm1588_vm3 = vcmp.lt.s32.totalorder %v3873_v16, 15  ;;  %vm2232_vm12 = vcmask 62464  }
 0x1a1   : > { %v3035_v2 = vpack.c.bf16 %v782_v1, %v777_v63  ;;  %2776 = vmatmul.mubr.f32.gmra.mrb[22].mxu0 %v782_v1  ;;  %vm950_vm7 = vcmp.eq.s32.totalorder %v3875_v17, %v910_v23  ;;  %vm953_vm11 = vcmp.eq.s32.totalorder %v3875_v17, %v937_v40  ;;  %v3070_v63 = vpack.c.bf16 %v1244_v62, %v1243_v47  ;;  %v1230_v1 = vld [vmem:[#allocation4 + $0x98] sm:$0xff]  ;;  %v1220_v40 = vld [vmem:[#allocation4 + $0x48] sm:$0xff]  ;;  %v1241_v62 = vld [vmem:[#allocation4 + $0xf0] sm:$0xff] }
 0x1a2   : > { %v2376_v50 = vsel %vm953_vm11, 1.0, %v3504_v3  ;;  %v1256_v47 = vld [vmem:[#allocation4 + $0x168] sm:$0xff] }
 0x1a3   : > { %3071 = vmatprep.subr.bf16.mxu0 %v3070_v63 }
 0x1a4   : > { %3073 = vmatpush3.bf16.msra.mxu0 %v3070_v63  ;;  %v1242_v63 = vld [vmem:[#allocation4 + $0xf8] sm:$0xff] }
 0x25c   : > { %v2768_v4 = vpop.f32.mrb[16].mxu0 }
 0x25d   : > { %v851_v5 = vpop.f32.mrb[17].mxu0 }
 0x25e   : > { %v3020_v6 = vpack.c.bf16 %v2768_v4, %v851_v5  ;;  %v1213_v4 = vld [vmem:[#allocation4 + $0x10] sm:$0xff]  ;;  %v1214_v5 = vld [vmem:[#allocation4 + $0x18] sm:$0xff] }
 0x260   : > { %3021 = vmatprep.subr.bf16.mxu1 %v3020_v6  ;;  %v3044_v6 = vpack.c.bf16 %v1214_v5, %v1213_v4  ;;  %v1225_v4 = vld [vmem:[#allocation4 + $0x70] sm:$0xff]  ;;  %v1226_v5 = vld [vmem:[#allocation4 + $0x78] sm:$0xff] }
 0x261   : > { %3023 = vmatpush1.bf16.msra.mxu1 %v3022_v34  ;;  %v2373_v34 = vsel %vm950_vm7, 1.0, %v3504_v3 }
 0x264   : > { %v2771_v7 = vpop.f32.mrb[18].mxu0 }
 0x265   : > { %v861_v8 = vpop.f32.mrb[19].mxu0 }
 0x266   : > { %v3024_v9 = vpack.c.bf16 %v2771_v7, %v861_v8  ;;  %v1245_v7 = vld [vmem:[#allocation4 + $0x110] sm:$0xff]  ;;  %v1246_v8 = vld [vmem:[#allocation4 + $0x118] sm:$0xff] }
 0x268   : > { %3025 = vmatprep.subr.bf16.mxu1 %v3024_v9  ;;  %v3074_v9 = vpack.c.bf16 %v1246_v8, %v1245_v7  ;;  %v1257_v7 = vld [vmem:[#allocation4 + $0x170] sm:$0xff]  ;;  %v1258_v8 = vld [vmem:[#allocation4 + $0x178] sm:$0xff] }
 0x269   : > { %3027 = vmatpush1.bf16.msra.mxu1 %v3026_v49  ;;  %v2371_v49 = vadd.s32 4294967265, %v898_v43  ;;  %v1251_v43 = vld [vmem:[#allocation4 + $0x140] sm:$0xff] }
 0x26a   : > { %3075 = vmatprep.subr.bf16.mxu0 %v3074_v9 }
 0x26b   : > { %v932_v52 = vmul.u32 2, %v2371_v49  ;;  %3077 = vmatpush3.bf16.msra.mxu0 %v3074_v9  ;;  %v1238_v49 = vld [vmem:[#allocation4 + $0xd8] sm:$0xff]  ;;  %v3098_v9 = vpack.c.bf16 %v1258_v8, %v1257_v7 }
 0x26c   : > { %v2774_v11 = vpop.f32.mrb[20].mxu0 }
 0x26d   : > { %v871_v13 = vpop.f32.mrb[21].mxu0  ;;  %v940_v53 = vadd.s32 1, %v932_v52  ;;  %v3058_v52 = vpack.c.bf16 %v1238_v49, %v1237_v45 }
 0x26e   : > { %v3028_v14 = vpack.c.bf16 %v2774_v11, %v871_v13  ;;  %v1232_v11 = vld [vmem:[#allocation4 + $0xa8] sm:$0xff] }
 0x26f   : > { %vm956_vm14 = vcmp.eq.s32.totalorder %v3875_v17, %v940_v53  ;;  %v3046_v13 = vpack.c.bf16 %v1232_v11, %v1231_v10  ;;  %v1254_v53 = vld [vmem:[#allocation4 + $0x158] sm:$0xff]  ;;  %v1260_v10 = vld [vmem:[#allocation6] sm:$0xff]  ;;  %v1261_v11 = vld [vmem:[#allocation6 + $0x8] sm:$0xff] }
 0x270   : > { %3029 = vmatprep.subr.bf16.mxu1 %v3028_v14  ;;  %v2379_v55 = vsel %vm956_vm14, 1.0, %v3504_v3  ;;  %v1215_v14 = vld [vmem:[#allocation4 + $0x20] sm:$0xff] }
 0x271   : > { %3031 = vmatpush1.bf16.msra.mxu1 %v3030_v59  ;;  %v1211_v59 = vld [vmem:[#allocation4] sm:$0xff] }
 0x272   : > { %v3040_v61 = vpack.c.bf16 %v1212_v60, %v1211_v59  ;;  %v1224_v60 = vld [vmem:[#allocation4 + $0x68] sm:$0xff] }
 0x274   : > { %v2777_v20 = vpop.f32.mrb[22].mxu0 }
 0x275   : > { %v881_v21 = vpop.f32.mrb[23].mxu0 }
 0x276   : > { %v3032_v25 = vpack.c.bf16 %v2777_v20, %v881_v21  ;;  %v3048_v20 = vpack.c.bf16 %v1216_v19, %v1215_v14  ;;  %v1247_v21 = vld [vmem:[#allocation4 + $0x120] sm:$0xff] }
 0x278   : > { %3034 = vmatprep.subr.msk.bf16.mxu1 %vm3880_vm4, %v3032_v25  ;;  %v1248_v25 = vld [vmem:[#allocation4 + $0x128] sm:$0xff] }
 0x279   : > { %3037 = vmatpush1.bf16.msk.msra.mxu1 %vm3880_vm4, %v3035_v2  ;;  %v3042_v2 = vpack.c.bf16 %v1230_v1, %v1229_v0  ;;  %v3078_v26 = vpack.c.bf16 %v1248_v25, %v1247_v21 }
 0x27a   : > { %3039 = vmatprep.subr.bf16.mxu1 %v3038_v58  ;;  %v1223_v58 = vld [vmem:[#allocation4 + $0x60] sm:$0xff] }
 0x27b   : > { %3079 = vmatprep.subr.bf16.mxu0 %v3078_v26  ;;  %v3064_v0 = vpack.c.bf16 %v1224_v60, %v1223_v58 }
 0x27c   : > { %2382 = vmatmul.mubr.msk.f32.vlgmr.msra.gmra.mrb[8].mxu1 %vm973_vm6, %v3897_v28  ;;  %3081 = vmatpush3.bf16.msra.mxu0 %v3078_v26 }
 0x27d   : > { %1074 = vmatprep.mubr.f32.mxu1 %v3504_v3  ;;  %3041 = vmatpush3.bf16.msra.mxu1 %v3040_v61  ;;  %v1255_v61 = vld [vmem:[#allocation4 + $0x160] sm:$0xff] }
 0x27e   : > { %3043 = vmatprep.subr.bf16.mxu1 %v3042_v2  ;;  %v3094_v1 = vpack.c.bf16 %v1256_v47, %v1255_v61  ;;  %v3066_v2 = vpack.c.bf16 %v1242_v63, %v1241_v62 }
 0x280   : > { %2383 = vmatmul.mubr.msk.f32.gmra.mrb[10].mxu1 %vm973_vm6, %v2373_v34  ;;  %v1249_v34 = vld [vmem:[#allocation4 + $0x130] sm:$0xff] }
 0x281   : > { %1080 = vmatprep.mubr.f32.mxu1 %v3504_v3  ;;  %3045 = vmatpush3.bf16.msra.mxu1 %v3044_v6  ;;  %v3082_v37 = vpack.c.bf16 %v1250_v35, %v1249_v34  ;;  %v3068_v6 = vpack.c.bf16 %v1226_v5, %v1225_v4 }
 0x282   : > { %3047 = vmatprep.subr.bf16.mxu1 %v3046_v13  ;;  %v3937_v13 = vpack.c.bf16 %v1261_v11, %v1260_v10 }
 0x283   : > { %3083 = vmatprep.subr.bf16.mxu0 %v3082_v37 }
 0x284   : > { %2384 = vmatmul.mubr.msk.f32.gmra.mrb[12].mxu1 %vm973_vm6, %v2374_v39  ;;  %v1219_v39 = vld [vmem:[#allocation4 + $0x40] sm:$0xff]  ;;  %3085 = vmatpush3.bf16.msra.mxu0 %v3082_v37 }
 0x285   : > { %1086 = vmatprep.mubr.f32.mxu1 %v3504_v3  ;;  %3049 = vmatpush3.bf16.msra.mxu1 %v3048_v20  ;;  %v3056_v42 = vpack.c.bf16 %v1220_v40, %v1219_v39 }
 0x286   : > { %3051 = vmatprep.subr.bf16.mxu1 %v3050_v30 }
 0x288   : > { %2385 = vmatmul.mubr.msk.f32.gmra.mrb[14].mxu1 %vm973_vm6, %v2375_v44  ;;  %v1252_v44 = vld [vmem:[#allocation4 + $0x148] sm:$0xff] }
 0x289   : > { %1092 = vmatprep.mubr.f32.mxu1 %v3504_v3  ;;  %3053 = vmatpush3.bf16.msra.mxu1 %v3052_v33  ;;  %v3086_v48 = vpack.c.bf16 %v1252_v44, %v1251_v43 }
 0x28a   : > { %3055 = vmatprep.subr.bf16.mxu1 %v3054_v41 }
 0x28b   : > { %3087 = vmatprep.subr.bf16.mxu0 %v3086_v48 }
 0x28c   : > { %2386 = vmatmul.mubr.msk.f32.gmra.mrb[16].mxu1 %vm973_vm6, %v2376_v50  ;;  %v1221_v50 = vld [vmem:[#allocation4 + $0x50] sm:$0xff]  ;;  %3089 = vmatpush3.bf16.msra.mxu0 %v3086_v48 }
 0x28d   : > { %1098 = vmatprep.mubr.f32.mxu1 %v3504_v3  ;;  %3057 = vmatpush3.bf16.msra.mxu1 %v3056_v42  ;;  %v3060_v56 = vpack.c.bf16 %v1222_v51, %v1221_v50 }
 0x28e   : > { %3059 = vmatprep.subr.bf16.mxu1 %v3058_v52 }
 0x290   : > { %2387 = vmatmul.mubr.msk.f32.gmra.mrb[18].mxu1 %vm973_vm6, %v2377_v46  ;;  %v1253_v46 = vld [vmem:[#allocation4 + $0x150] sm:$0xff] }
 0x291   : > { %1104 = vmatprep.mubr.f32.mxu1 %v3504_v3  ;;  %v3090_v57 = vpack.c.bf16 %v1254_v53, %v1253_v46  ;;  %3061 = vmatpush3.bf16.msra.mxu1 %v3060_v56 }
 0x293   : > { %3091 = vmatprep.subr.bf16.mxu0 %v3090_v57 }
 0x294   : > { %2388 = vmatmul.mubr.msk.f32.gmra.mrb[20].mxu1 %vm973_vm6, %v2378_v54  ;;  %v1239_v54 = vld [vmem:[#allocation4 + $0xe0] sm:$0xff]  ;;  %3093 = vmatpush3.bf16.msra.mxu0 %v3090_v57 }
 0x295   : > { %1110 = vmatprep.mubr.f32.mxu1 %v3504_v3  ;;  %3095 = vmatprep.subr.bf16.mxu0 %v3094_v1 }
 0x298   : > { %2389 = vmatmul.mubr.msk.f32.gmra.mrb[22].mxu1 %vm973_vm6, %v2379_v55  ;;  %v1240_v55 = vld [vmem:[#allocation4 + $0xe8] sm:$0xff]  ;;  %3097 = vmatpush3.bf16.msra.mxu0 %v3094_v1 }
 0x299   : > { %v3062_v59 = vpack.c.bf16 %v1240_v55, %v1239_v54  ;;  %3099 = vmatprep.subr.bf16.mxu0 %v3098_v9 }
 0x29b   : > { %3063 = vmatprep.subr.bf16.mxu1 %v3062_v59 }
 0x29c   : > { %3065 = vmatpush3.bf16.msra.mxu1 %v3064_v0  ;;  %3101 = vmatpush3.bf16.msra.mxu0 %v3098_v9 }
 0x29d   : > { %3067 = vmatprep.subr.bf16.mxu1 %v3066_v2 }
 0x2a0   : > { %3069 = vmatpush3.bf16.msra.mxu1 %v3068_v6 }
 0x2a1   : > { %3103 = vmatprep.subr.bf16.mxu1 %v3937_v13 }
 0x34f   : > { %v3940_v14 = vpop.f32.mrb[8].mxu1 }
 0x350   : > { %v1072_v19 = vpop.f32.mrb[9].mxu1 }
 0x353   : > { %v3942_v20 = vpop.f32.mrb[10].mxu1 }
 0x354   : > { %v1078_v21 = vpop.f32.mrb[11].mxu1 }
 0x357   : > { %v3944_v25 = vpop.f32.mrb[12].mxu1 }
 0x358   : > { %v1084_v26 = vpop.f32.mrb[13].mxu1 }
 0x35b   : > { %v3946_v27 = vpop.f32.mrb[14].mxu1 }
 0x35c   : > { %v1090_v29 = vpop.f32.mrb[15].mxu1  ;;  %v1169_v31 = vrot.slane %v3946_v27, 7 }
 0x35d   : > { %v1123_v34 = vrot.slane %v1090_v29, 7 }
 0x35f   : > { %v3948_v30 = vpop.f32.mrb[16].mxu1 }
 0x360   : > { %v1170_v32 = vrot.slane %v3948_v30, 7  ;;  %v1096_v33 = vpop.f32.mrb[17].mxu1 }
 0x361   : > { %v1124_v35 = vrot.slane %v1096_v33, 7 }
 0x362   : > { %v1171_v36 = vsel %vm1122_vm15, %v1169_v31, %v1170_v32 }
 0x363   : > { %v1182_v37 = vsub.f32 %v3940_v14, %v1171_v36  ;;  %v1125_v38 = vsel %vm1122_vm15, %v1123_v34, %v1124_v35  ;;  %v1100_v39 = vpop.f32.mrb[18].mxu1 }
 0x364   : > { %v1136_v40 = vsub.f32 %v1072_v19, %v1125_v38  ;;  %v1172_v41 = vrot.slane %v1100_v39, 7  ;;  %v1102_v42 = vpop.f32.mrb[19].mxu1 }
 0x365   : > { %v1126_v43 = vrot.slane %v1102_v42, 7 }
 0x366   : > { %v2390_v44 = vmul.f32 -1.442695, %v1136_v40  ;;  %v1173_v45 = vsel %vm1122_vm15, %v1170_v32, %v1172_v41 }
 0x367   : > { %v1183_v48 = vsub.f32 %v3942_v20, %v1173_v45  ;;  %v1127_v49 = vsel %vm1122_vm15, %v1124_v35, %v1126_v43  ;;  %v1106_v50 = vpop.f32.mrb[20].mxu1 }
 0x368   : > { %3309 = vpow2.f32 %v2390_v44  ;;  %v1137_v51 = vsub.f32 %v1078_v21, %v1127_v49  ;;  %v1174_v52 = vrot.slane %v1106_v50, 7  ;;  %v1108_v46 = vpop.f32.mrb[21].mxu1 }
 0x369   : > { %v1128_v53 = vrot.slane %v1108_v46, 7 }
 0x36a   : > { %v2391_v54 = vmul.f32 -1.442695, %v1137_v51  ;;  %v1175_v55 = vsel %vm1122_vm15, %v1172_v41, %v1174_v52 }
 0x36b   : > { %v1184_v56 = vsub.f32 %v3944_v25, %v1175_v55  ;;  %v1129_v57 = vsel %vm1122_vm15, %v1126_v43, %v1128_v53  ;;  %v1112_v58 = vpop.f32.mrb[22].mxu1 }
 0x36c   : > { %3311 = vpow2.f32 %v2391_v54  ;;  %v1138_v59 = vsub.f32 %v1084_v26, %v1129_v57  ;;  %v1176_v60 = vrot.slane %v1112_v58, 7  ;;  %v1114_v61 = vpop.f32.mrb[23].mxu1 }
 0x36d   : > { %v1130_v47 = vrot.slane %v1114_v61, 7 }
 0x36e   : > { %v2392_v62 = vmul.f32 -1.442695, %v1138_v59  ;;  %v1177_v63 = vsel %vm1122_vm15, %v1174_v52, %v1176_v60 }
 0x36f   : > { %v1185_v0 = vsub.f32 %v3946_v27, %v1177_v63  ;;  %v1131_v1 = vsel %vm1122_vm15, %v1128_v53, %v1130_v47  ;;  %v1263_v53 = vld [vmem:[#allocation6 + $0x18] sm:$0xff] }
 0x370   : > { %3313 = vpow2.f32 %v2392_v62  ;;  %v1139_v2 = vsub.f32 %v1090_v29, %v1131_v1  ;;  %v1264_v62 = vld [vmem:[#allocation6 + $0x20] sm:$0xff] }
 0x372   : > { %v3310_v4 = vpop.eup %3309  ;;  %v2393_v5 = vmul.f32 -1.442695, %v1139_v2 }
 0x373   : > { %v1152_v6 = vadd.f32 1.0, %v3310_v4 }
 0x374   : > { %3315 = vpow2.f32 %v2393_v5 }
 0x375   : > { %3317 = vrcp.f32 %v1152_v6 }
 0x376   : > { %v3312_v7 = vpop.eup %3311 }
 0x377   : > { %v1153_v8 = vadd.f32 1.0, %v3312_v7 }
 0x379   : > { %3319 = vrcp.f32 %v1153_v8 }
 0x37a   : > { %v3314_v9 = vpop.eup %3313 }
 0x37b   : > { %v1154_v10 = vadd.f32 1.0, %v3314_v9 }
 0x37d   : > { %3321 = vrcp.f32 %v1154_v10  ;;  %v1266_v10 = vld [vmem:[#allocation6 + $0x30] sm:$0xff] }
 0x37e   : > { %v3316_v11 = vpop.eup %3315 }
 0x37f   : > { %v3318_v14 = vpop.eup %3317  ;;  %v1155_v19 = vadd.f32 1.0, %v3316_v11  ;;  %v1267_v11 = vld [vmem:[#allocation6 + $0x38] sm:$0xff] }
 0x380   : > { %v1186_v20 = vmul.f32 %v3318_v14, %v1182_v37  ;;  %v1268_v14 = vld [vmem:[#allocation6 + $0x40] sm:$0xff] }
 0x381   : > { %3323 = vrcp.f32 %v1155_v19  ;;  %v1269_v19 = vld [vmem:[#allocation6 + $0x48] sm:$0xff] }
 0x382   : > { %v1194_v21 = vrot.slane %v1186_v20, 1  ;;  %v3118_v20 = vpack.c.bf16 %v1269_v19, %v1268_v14  ;;  %v1792_v19 = vld [vmem:[#allocation7 + $0x80] sm:$0xff] }
 0x383   : > { %v3320_v25 = vpop.eup %3319 }
 0x384   : > { %v1187_v26 = vmul.f32 %v3320_v25, %v1183_v48  ;;  %v1206_v29 = vadd.f32 %v1194_v21, %v3946_v27  ;;  %v1271_v25 = vld [vmem:[#allocation6 + $0x58] sm:$0xff] }
 0x386   : > { %v1195_v31 = vrot.slane %v1187_v26, 1  ;;  %v1281_v40 = vrot.slane %v1206_v29, 7  ;;  %v1272_v29 = vld [vmem:[#allocation6 + $0x60] sm:$0xff] }
 0x387   : > { %v3322_v32 = vpop.eup %3321 }
 0x388   : > { %v1188_v33 = vmul.f32 %v3322_v32, %v1184_v56  ;;  %v1196_v34 = vsel %vm521_vm1, %v1194_v21, %v1195_v31  ;;  %v1270_v21 = vld [vmem:[#allocation6 + $0x50] sm:$0xff] }
 0x389   : > { %v1207_v35 = vadd.f32 %v1196_v34, %v3948_v30  ;;  %v1262_v30 = vld [vmem:[#allocation6 + $0x10] sm:$0xff]  ;;  %v3122_v26 = vpack.c.bf16 %v1271_v25, %v1270_v21  ;;  %v1275_v34 = vld [vmem:[#allocation6 + $0x78] sm:$0xff]  ;;  %v1808_v21 = vld [vmem:[#allocation7 + $0x100] sm:$0xff] }
 0x38a   : > { %v1197_v36 = vrot.slane %v1188_v33, 1  ;;  %v3106_v61 = vpack.c.bf16 %v1263_v53, %v1262_v30  ;;  %v1274_v33 = vld [vmem:[#allocation6 + $0x70] sm:$0xff] }
 0x38b   : > { %v3324_v38 = vpop.eup %3323  ;;  %v1282_v41 = vrot.slane %v1207_v35, 7  ;;  %v3130_v35 = vpack.c.bf16 %v1275_v34, %v1274_v33  ;;  %v1794_v34 = vld [vmem:[#allocation7 + $0x90] sm:$0xff] }
 0x38c   : > { %v1198_v42 = vsel %vm521_vm1, %v1195_v31, %v1197_v36  ;;  %v1189_v37 = vmul.f32 %v3324_v38, %v1185_v0  ;;  %v1273_v31 = vld [vmem:[#allocation6 + $0x68] sm:$0xff] }
 0x38d   : > { %v1208_v43 = vadd.f32 %v1198_v42, %v1100_v39  ;;  %v1283_v44 = vsel %vm1122_vm15, %v1281_v40, %v1282_v41  ;;  %v3126_v32 = vpack.c.bf16 %v1273_v31, %v1272_v29  ;;  %v2394_v40 = vld [vmem:[%s4059_s5] ss:$0 sm:$0xff]  ;;  %v1777_v31 = vld [vmem:[#allocation7 + $0x8] sm:$0xff] }
 0x38e   : > { %v1199_v45 = vrot.slane %v1189_v37, 1  ;;  %v1296_v52 = vrot.slane %v1283_v44, 1  ;;  %v1307_v55 = vrot.slane %v1283_v44, 2  ;;  %v1776_v29 = vld [vmem:[#allocation7] sm:$0xff] }
 0x38f   : > { %v1284_v48 = vrot.slane %v1208_v43, 7  ;;  %v3146_v33 = vpack.c.bf16 %v1777_v31, %v1776_v29  ;;  %v1807_v29 = vld [vmem:[#allocation7 + $0xf8] sm:$0xff]  ;;  %v1822_v31 = vld [vmem:[#allocation7 + $0x170] sm:$0xff] }
 0x390   : > { %v1200_v27 = vsel %vm521_vm1, %v1197_v36, %v1199_v45  ;;  %v1210_v49 = vadd.f32 %v1199_v45, %v1112_v58 }
 0x391   : > { %v1285_v51 = vsel %vm1122_vm15, %v1282_v41, %v1284_v48  ;;  %v1209_v46 = vadd.f32 %v1200_v27, %v1106_v50  ;;  %v1265_v50 = vld [vmem:[#allocation6 + $0x28] sm:$0xff] }
 0x392   : > { %v1297_v54 = vrot.slane %v1285_v51, 1  ;;  %v1308_v56 = vrot.slane %v1285_v51, 2  ;;  %v1288_v57 = vrot.slane %v1210_v49, 7  ;;  %v3110_v7 = vpack.c.bf16 %v1265_v50, %v1264_v62 }
 0x393   : > { %v1286_v59 = vrot.slane %v1209_v46, 7  ;;  %v2398_v50 = vadd.s32 4294967281, %v3873_v16 }
 0x394   : > { %v1298_v39 = vsel %vm521_vm1, %v1296_v52, %v1297_v54  ;;  %v1309_v60 = vsel %vm545_vm2, %v1307_v55, %v1308_v56 }
 0x395   : > { %1388 = vmatprep.mubr.f32.mxu1 %v1298_v39  ;;  %2810 = vmatprep.mubr.f32.mxu0 %v1309_v60  ;;  %v1287_v58 = vsel %vm1122_vm15, %v1284_v48, %v1286_v59  ;;  %v1289_v47 = vsel %vm1122_vm15, %v1286_v59, %v1288_v57 }
 0x396   : > { %1389 = vmatmul.mubr.f32.vlgmr.msra.gmra.mrb[24].mxu1 %v1283_v44  ;;  %v1299_v63 = vrot.slane %v1287_v58, 1  ;;  %v1310_v0 = vrot.slane %v1287_v58, 2  ;;  %v1294_v1 = vsel %vm521_vm1, %v1289_v47, 0.0 }
 0x397   : > { %v1312_v2 = vrot.slane %v1294_v1, 2  ;;  %v1301_v4 = vrot.slane %v1294_v1, 1  ;;  %3105 = vmatpush3.bf16.msra.mxu1 %v3937_v13  ;;  %v3114_v13 = vpack.c.bf16 %v1267_v11, %v1266_v10  ;;  %v2400_v10 = vadd.s32 4294967281, %v3870_v15 }
 0x398   : > { %v1300_v5 = vsel %vm521_vm1, %v1297_v54, %v1299_v63  ;;  %v1311_v6 = vsel %vm545_vm2, %v1308_v56, %v1310_v0  ;;  %3107 = vmatprep.subr.bf16.mxu1 %v3106_v61 }
 0x399   : > { %1393 = vmatprep.mubr.f32.mxu1 %v1300_v5  ;;  %2811 = vmatmul.mubr.f32.vlgmr.msra.gmra.mrb[24].mxu0 %v1311_v6  ;;  %v1313_v8 = vsel %vm545_vm2, %v1310_v0, %v1312_v2  ;;  %v1302_v9 = vsel %vm521_vm1, %v1299_v63, %v1301_v4 }
 0x39a   : > { %1394 = vmatmul.mubr.f32.gmra.mrb[26].mxu1 %v1285_v51  ;;  %2813 = vmatprep.mubr.f32.mxu0 %v1313_v8 }
 0x39b   : > { %1398 = vmatprep.mubr.f32.mxu1 %v1302_v9  ;;  %3109 = vmatpush3.bf16.msra.mxu1 %v3106_v61 }
 0x39c   : > { %3111 = vmatprep.subr.bf16.mxu1 %v3110_v7 }
 0x39d   : > { %2814 = vmatmul.mubr.f32.gmra.mrb[26].mxu0 %v1312_v2  ;;  %v1596_v2 = vmul.u32 2, %v2398_v50 }
 0x39e   : > { %1399 = vmatmul.mubr.f32.gmra.mrb[28].mxu1 %v1287_v58 }
 0x39f   : > { %1403 = vmatprep.mubr.f32.mxu1 %v1301_v4  ;;  %3113 = vmatpush3.bf16.msra.mxu1 %v3110_v7  ;;  %v2399_v4 = vadd.s32 4294967281, %v3886_v24  ;;  %v1600_v5 = vadd.s32 1, %v1596_v2 }
 0x3a0   : > { %3115 = vmatprep.subr.bf16.mxu1 %v3114_v13 }
 0x3a1   : > { %v1597_v9 = vmul.u32 2, %v2399_v4  ;;  %v1604_v11 = vsel %vm1588_vm3, %v910_v23, %v1600_v5  ;;  %v1802_v4 = vld [vmem:[#allocation7 + $0xd0] sm:$0xff]  ;;  %v1803_v5 = vld [vmem:[#allocation7 + $0xd8] sm:$0xff] }
 0x3a2   : > { %2395 = vmatmul.mubr.msk.f32.gmra.mrb[30].mxu1 %vm521_vm1, %v1289_v47  ;;  %vm1608_vm6 = vcmp.eq.s32.totalorder %v3875_v17, %v1604_v11  ;;  %v1787_v11 = vld [vmem:[#allocation7 + $0x58] sm:$0xff] }
 0x3a3   : > { %3117 = vmatpush3.bf16.msra.mxu1 %v3114_v13  ;;  %v1601_v24 = vadd.s32 1, %v1597_v9  ;;  %v1598_v13 = vmul.u32 2, %v2400_v10  ;;  %v2402_v15 = vsel %vm1608_vm6, 1.0, %v3504_v3  ;;  %v3164_v9 = vpack.c.bf16 %v1803_v5, %v1802_v4  ;;  %v1786_v10 = vld [vmem:[#allocation7 + $0x50] sm:$0xff] }
 0x3a4   : > { %3119 = vmatprep.subr.bf16.mxu1 %v3118_v20 }
 0x3a5   : > { %vm1609_vm7 = vcmp.eq.s32.totalorder %v3875_v17, %v1601_v24  ;;  %v1602_v23 = vadd.s32 1, %v1598_v13  ;;  %v1804_v13 = vld [vmem:[#allocation7 + $0xe0] sm:$0xff] }
 0x3a6   : > { %v2403_v14 = vsel %vm1609_vm7, 1.0, %v3504_v3 }
 0x3a7   : > { %3121 = vmatpush3.bf16.msra.mxu1 %v3118_v20  ;;  %vm1610_vm8 = vcmp.eq.s32.totalorder %v3875_v17, %v1602_v23  ;;  %v1793_v20 = vld [vmem:[#allocation7 + $0x88] sm:$0xff]  ;;  %v1820_v23 = vld [vmem:[#allocation7 + $0x160] sm:$0xff] }
 0x3a8   : > { %3123 = vmatprep.subr.bf16.mxu1 %v3122_v26  ;;  %v3144_v25 = vpack.c.bf16 %v1793_v20, %v1792_v19  ;;  %v1788_v20 = vld [vmem:[#allocation7 + $0x60] sm:$0xff] }
 0x3aa   : > { %3145 = vmatprep.subr.bf16.mxu0 %v3144_v25 }
 0x3ab   : > { %3125 = vmatpush3.bf16.msra.mxu1 %v3122_v26  ;;  %v1809_v26 = vld [vmem:[#allocation7 + $0x108] sm:$0xff]  ;;  %3147 = vmatpush3.bf16.msra.mxu0 %v3146_v33 }
 0x3ac   : > { %3127 = vmatprep.subr.bf16.mxu1 %v3126_v32 }
 0x3af   : > { %3129 = vmatpush3.bf16.msra.mxu1 %v3126_v32  ;;  %v3176_v32 = vpack.c.bf16 %v1809_v26, %v1808_v21  ;;  %v1789_v21 = vld [vmem:[#allocation7 + $0x68] sm:$0xff]  ;;  %v1806_v26 = vld [vmem:[#allocation7 + $0xf0] sm:$0xff] }
 0x3b0   : > { %3131 = vmatprep.subr.bf16.mxu1 %v3130_v35  ;;  %v3170_v33 = vpack.c.bf16 %v1789_v21, %v1788_v20 }
 0x3b3   : > { %3133 = vmatpush3.bf16.msra.mxu1 %v3130_v35  ;;  %v1795_v35 = vld [vmem:[#allocation7 + $0x98] sm:$0xff] }
 0x469   : > { %v2564_v36 = vpop.f32.mrb[24].mxu1 }
 0x46a   : > { %v2565_v38 = vpop.f32.mrb[25].mxu1 }
 0x46b   : > { %v2566_v41 = vadd.f32 %v2565_v38, %v2564_v36  ;;  %v1810_v36 = vld [vmem:[#allocation7 + $0x110] sm:$0xff]  ;;  %v3148_v38 = vpack.c.bf16 %v1795_v35, %v1794_v34  ;;  %v3172_v34 = vpack.c.bf16 %v1807_v29, %v1806_v26 }
 0x46c   : > { %v2812_v42 = vpop.f32.mrb[24].mxu0  ;;  %v1790_v35 = vld [vmem:[#allocation7 + $0x70] sm:$0xff] }
 0x46d   : > { %v2567_v37 = vpop.f32.mrb[26].mxu1  ;;  %v1391_v43 = vadd.f32 %v2566_v41, %v2394_v40  ;;  %v1475_v44 = vpop.f32.mrb[25].mxu0  ;;  %v1778_v41 = vld [vmem:[#allocation7 + $0x10] sm:$0xff]  ;;  %3149 = vmatprep.subr.bf16.mxu0 %v3148_v38 }
 0x46e   : > { %v2568_v45 = vpop.f32.mrb[27].mxu1  ;;  %v1827_v29 = vld [vmem:[#allocation9 + $0x10] sm:$0xff] }
 0x46f   : > { %v1476_v48 = vadd.f32 %v1475_v44, %v1391_v43  ;;  %v2569_v27 = vadd.f32 %v2568_v45, %v2567_v37  ;;  %v1796_v44 = vld [vmem:[#allocation7 + $0xa0] sm:$0xff]  ;;  %v1797_v45 = vld [vmem:[#allocation7 + $0xa8] sm:$0xff] }
 0x470   : > { %v2815_v49 = vpop.f32.mrb[26].mxu0 }
 0x471   : > { %v1396_v51 = vadd.f32 %v2569_v27, %v2394_v40  ;;  %v2570_v52 = vpop.f32.mrb[28].mxu1  ;;  %v1485_v46 = vpop.f32.mrb[27].mxu0  ;;  %2848 = vmatprep.mubr.f32.mxu1 %v1476_v48  ;;  %v3152_v27 = vpack.c.bf16 %v1797_v45, %v1796_v44 }
 0x472   : > { %v2571_v30 = vpop.f32.mrb[29].mxu1 }
 0x473   : > { %v1481_v53 = vadd.f32 %v2812_v42, %v1396_v51  ;;  %v2572_v54 = vadd.f32 %v2571_v30, %v2570_v52  ;;  %v1779_v42 = vld [vmem:[#allocation7 + $0x18] sm:$0xff]  ;;  %v1780_v51 = vld [vmem:[#allocation7 + $0x20] sm:$0xff]  ;;  %v1781_v52 = vld [vmem:[#allocation7 + $0x28] sm:$0xff] }
 0x474   : > { %v3150_v43 = vpack.c.bf16 %v1779_v42, %v1778_v41  ;;  %v3154_v30 = vpack.c.bf16 %v1781_v52, %v1780_v51  ;;  %v1825_v41 = vld [vmem:[#allocation9] sm:$0xff]  ;;  %v1826_v42 = vld [vmem:[#allocation9 + $0x8] sm:$0xff] }
 0x475   : > { %v3136_v55 = vpack.c.bf16 %v1481_v53, %v1476_v48  ;;  %v1401_v56 = vadd.f32 %v2572_v54, %v2394_v40  ;;  %v2573_v57 = vpop.f32.mrb[30].mxu1  ;;  %2849 = vmatmul.mubr.f32.vlgmr.msra.gmra.mrb[32].mxu1 %v1481_v53  ;;  %v1812_v48 = vld [vmem:[#allocation7 + $0x120] sm:$0xff]  ;;  %v1798_v53 = vld [vmem:[#allocation7 + $0xb0] sm:$0xff]  ;;  %v1799_v54 = vld [vmem:[#allocation7 + $0xb8] sm:$0xff] }
 0x476   : > { %v2574_v59 = vpop.f32.mrb[31].mxu1  ;;  %3151 = vmatpush3.bf16.msra.mxu0 %v3150_v43 }
 0x477   : > { %v2575_v39 = vadd.f32 %v2574_v59, %v2573_v57  ;;  %v1486_v60 = vadd.f32 %v1485_v46, %v1401_v56  ;;  %3153 = vmatprep.subr.bf16.mxu0 %v3152_v27  ;;  %v3156_v56 = vpack.c.bf16 %v1799_v54, %v1798_v53  ;;  %v1815_v57 = vld [vmem:[#allocation7 + $0x138] sm:$0xff]  ;;  %v1782_v59 = vld [vmem:[#allocation7 + $0x30] sm:$0xff] }
 0x479   : > { %v1406_v61 = vadd.f32 %v2575_v39, %v2394_v40  ;;  %2851 = vmatprep.mubr.f32.mxu1 %v1486_v60  ;;  %v1811_v40 = vld [vmem:[#allocation7 + $0x118] sm:$0xff] }
 0x47a   : > { %v3180_v37 = vpack.c.bf16 %v1811_v40, %v1810_v36  ;;  %v1783_v39 = vld [vmem:[#allocation7 + $0x38] sm:$0xff]  ;;  %3155 = vmatpush3.bf16.msra.mxu0 %v3154_v30 }
 0x47b   : > { %v1491_v58 = vadd.f32 %v2815_v49, %v1406_v61  ;;  %v1813_v49 = vld [vmem:[#allocation7 + $0x128] sm:$0xff]  ;;  %v3158_v61 = vpack.c.bf16 %v1783_v39, %v1782_v59  ;;  %3157 = vmatprep.subr.bf16.mxu0 %v3156_v56  ;;  %v1791_v36 = vld [vmem:[#allocation7 + $0x78] sm:$0xff] }
 0x47c   : > { %v3184_v46 = vpack.c.bf16 %v1813_v49, %v1812_v48  ;;  %v3174_v40 = vpack.c.bf16 %v1791_v36, %v1790_v35 }
 0x47d   : > { %v1501_v47 = vsel %vm1497_vm0, %v1491_v58, 0.0  ;;  %2852 = vmatmul.mubr.msk.f32.gmra.mrb[34].mxu1 %vm1497_vm0, %v1491_v58  ;;  %v1800_v58 = vld [vmem:[#allocation7 + $0xc0] sm:$0xff] }
 0x47e   : > { %v3141_v62 = vpack.c.bf16 %v1501_v47, %v1486_v60  ;;  %1702 = vmatprep.mubr.f32.mxu1 %v3504_v3  ;;  %v1801_v47 = vld [vmem:[#allocation7 + $0xc8] sm:$0xff]  ;;  %3159 = vmatpush3.bf16.msra.mxu0 %v3158_v61 }
 0x47f   : > { %v3160_v50 = vpack.c.bf16 %v1801_v47, %v1800_v58 }
 0x481   : > { %3161 = vmatprep.subr.bf16.mxu0 %v3160_v50 }
 0x548   : > { %v2850_v63 = vpop.f32.mrb[32].mxu1 }
 0x549   : > { %v1568_v0 = vpop.f32.mrb[33].mxu1 }
 0x54a   : > { %v3134_v1 = vpack.c.bf16 %v2850_v63, %v1568_v0  ;;  %v1817_v63 = vld [vmem:[#allocation7 + $0x148] sm:$0xff]  ;;  %v1784_v0 = vld [vmem:[#allocation7 + $0x40] sm:$0xff] }
 0x54c   : > { %3135 = vmatprep.subr.bf16.mxu1 %v3134_v1  ;;  %v1785_v1 = vld [vmem:[#allocation7 + $0x48] sm:$0xff] }
 0x54d   : > { %3137 = vmatpush1.bf16.msra.mxu1 %v3136_v55  ;;  %v1814_v55 = vld [vmem:[#allocation7 + $0x130] sm:$0xff] }
 0x54e   : > { %v3188_v60 = vpack.c.bf16 %v1815_v57, %v1814_v55 }
 0x550   : > { %v2853_v6 = vpop.f32.mrb[34].mxu1 }
 0x551   : > { %v1578_v7 = vpop.f32.mrb[35].mxu1 }
 0x552   : > { %v3138_v8 = vpack.c.bf16 %v2853_v6, %v1578_v7  ;;  %v1818_v6 = vld [vmem:[#allocation7 + $0x150] sm:$0xff]  ;;  %v1819_v7 = vld [vmem:[#allocation7 + $0x158] sm:$0xff] }
 0x553   : > { %v3196_v24 = vpack.c.bf16 %v1819_v7, %v1818_v6 }
 0x554   : > { %3140 = vmatprep.subr.msk.bf16.mxu1 %vm3880_vm4, %v3138_v8  ;;  %v3162_v8 = vpack.c.bf16 %v1785_v1, %v1784_v0 }
 0x555   : > { %3143 = vmatpush1.bf16.msk.msra.mxu1 %vm3880_vm4, %v3141_v62  ;;  %v1816_v62 = vld [vmem:[#allocation7 + $0x140] sm:$0xff] }
 0x556   : > { %3177 = vmatprep.subr.bf16.mxu1 %v3176_v32  ;;  %v3192_v2 = vpack.c.bf16 %v1817_v63, %v1816_v62  ;;  %3163 = vmatpush3.bf16.msra.mxu0 %v3162_v8 }
 0x557   : > { %3165 = vmatprep.subr.bf16.mxu0 %v3164_v9 }
 0x558   : > { %2407 = vmatmul.mubr.msk.f32.vlgmr.msra.gmra.mrb[36].mxu1 %vm1619_vm5, %v3897_v28  ;;  %v2404_v28 = vsel %vm1610_vm8, 1.0, %v3504_v3 }
 0x559   : > { %1708 = vmatprep.mubr.f32.mxu1 %v3504_v3  ;;  %3179 = vmatpush3.bf16.msra.mxu1 %v3176_v32  ;;  %v1823_v32 = vld [vmem:[#allocation7 + $0x178] sm:$0xff] }
 0x55a   : > { %3181 = vmatprep.subr.bf16.mxu1 %v3180_v37  ;;  %v3204_v38 = vpack.c.bf16 %v1823_v32, %v1822_v31  ;;  %v1828_v31 = vld [vmem:[#allocation9 + $0x18] sm:$0xff] }
 0x55b   : > { %v3212_v36 = vpack.c.bf16 %v1828_v31, %v1827_v29 }
 0x55c   : > { %2408 = vmatmul.mubr.msk.f32.gmra.mrb[38].mxu1 %vm1619_vm5, %v2402_v15  ;;  %v1805_v15 = vld [vmem:[#allocation7 + $0xe8] sm:$0xff] }
 0x55d   : > { %1714 = vmatprep.mubr.f32.mxu1 %v3504_v3  ;;  %3183 = vmatpush3.bf16.msra.mxu1 %v3180_v37  ;;  %v3168_v19 = vpack.c.bf16 %v1805_v15, %v1804_v13  ;;  %v4011_v37 = vpack.c.bf16 %v1826_v42, %v1825_v41  ;;  %v1831_v42 = vld [vmem:[#allocation9 + $0x30] sm:$0xff] }
 0x55e   : > { %3185 = vmatprep.subr.bf16.mxu1 %v3184_v46 }
 0x560   : > { %2409 = vmatmul.mubr.msk.f32.gmra.mrb[40].mxu1 %vm1619_vm5, %v2403_v14  ;;  %v1821_v14 = vld [vmem:[#allocation7 + $0x168] sm:$0xff] }
 0x561   : > { %1720 = vmatprep.mubr.f32.mxu1 %v3504_v3  ;;  %3187 = vmatpush3.bf16.msra.mxu1 %v3184_v46  ;;  %v3200_v25 = vpack.c.bf16 %v1821_v14, %v1820_v23 }
 0x562   : > { %3189 = vmatprep.subr.bf16.mxu1 %v3188_v60 }
 0x564   : > { %2410 = vmatmul.mubr.msk.f32.gmra.mrb[42].mxu1 %vm1619_vm5, %v2404_v28  ;;  %v3166_v28 = vpack.c.bf16 %v1787_v11, %v1786_v10 }
 0x565   : > { %3191 = vmatpush3.bf16.msra.mxu1 %v3188_v60 }
 0x566   : > { %3193 = vmatprep.subr.bf16.mxu1 %v3192_v2  ;;  %3167 = vmatpush3.bf16.msra.mxu0 %v3166_v28 }
 0x567   : > { %3169 = vmatprep.subr.bf16.mxu0 %v3168_v19 }
 0x569   : > { %3195 = vmatpush3.bf16.msra.mxu1 %v3192_v2 }
 0x56a   : > { %3197 = vmatprep.subr.bf16.mxu1 %v3196_v24  ;;  %3171 = vmatpush3.bf16.msra.mxu0 %v3170_v33 }
 0x56b   : > { %3173 = vmatprep.subr.bf16.mxu0 %v3172_v34 }
 0x56d   : > { %3199 = vmatpush3.bf16.msra.mxu1 %v3196_v24 }
 0x56e   : > { %3201 = vmatprep.subr.bf16.mxu1 %v3200_v25  ;;  %3175 = vmatpush3.bf16.msra.mxu0 %v3174_v40  ;;  %v1830_v40 = vld [vmem:[#allocation9 + $0x28] sm:$0xff] }
 0x56f   : > { %3209 = vmatprep.subr.bf16.mxu0 %v4011_v37 }
 0x571   : > { %3203 = vmatpush3.bf16.msra.mxu1 %v3200_v25 }
 0x572   : > { %3205 = vmatprep.subr.bf16.mxu1 %v3204_v38 }
 0x575   : > { %3207 = vmatpush3.bf16.msra.mxu1 %v3204_v38  ;;  %v1829_v38 = vld [vmem:[#allocation9 + $0x20] sm:$0xff] }
 0x576   : > { %v3216_v41 = vpack.c.bf16 %v1830_v40, %v1829_v38 }
 0x62b   : > { %v1704_v43 = vpop.f32.mrb[36].mxu1 }
 0x62c   : > { %v1706_v44 = vpop.f32.mrb[37].mxu1 }
 0x62f   : > { %v1710_v45 = vpop.f32.mrb[38].mxu1 }
 0x630   : > { %v1712_v48 = vpop.f32.mrb[39].mxu1  ;;  %v1754_v49 = vrot.slane %v1710_v45, 7 }
 0x631   : > { %v1730_v46 = vrot.slane %v1712_v48, 7 }
 0x633   : > { %v1716_v27 = vpop.f32.mrb[40].mxu1 }
 0x634   : > { %v1755_v51 = vrot.slane %v1716_v27, 7  ;;  %v1718_v52 = vpop.f32.mrb[41].mxu1 }
 0x635   : > { %v1731_v30 = vrot.slane %v1718_v52, 7  ;;  %v1837_v52 = vld [vmem:[#allocation9 + $0x60] sm:$0xff] }
 0x636   : > { %v1756_v53 = vsel %vm1122_vm15, %v1754_v49, %v1755_v51  ;;  %v1836_v49 = vld [vmem:[#allocation9 + $0x58] sm:$0xff] }
 0x637   : > { %v1761_v54 = vsub.f32 %v1704_v43, %v1756_v53  ;;  %v1732_v55 = vsel %vm1122_vm15, %v1730_v46, %v1731_v30  ;;  %v1722_v56 = vpop.f32.mrb[42].mxu1  ;;  %v1832_v43 = vld [vmem:[#allocation9 + $0x38] sm:$0xff]  ;;  %v1838_v46 = vld [vmem:[#allocation9 + $0x68] sm:$0xff]  ;;  %v1839_v53 = vld [vmem:[#allocation9 + $0x70] sm:$0xff] }
 0x638   : > { %v1737_v57 = vsub.f32 %v1706_v44, %v1732_v55  ;;  %v1757_v59 = vrot.slane %v1722_v56, 7  ;;  %v1724_v39 = vpop.f32.mrb[43].mxu1  ;;  %v3220_v44 = vpack.c.bf16 %v1832_v43, %v1831_v42 }
 0x639   : > { %v1733_v60 = vrot.slane %v1724_v39, 7  ;;  %v2413_v39 = vld [vmem:[%s4062_s8] ss:$0 sm:$0xff] }
 0x63a   : > { %v2411_v61 = vmul.f32 -1.442695, %v1737_v57  ;;  %v1758_v58 = vsel %vm1122_vm15, %v1755_v51, %v1757_v59 }
 0x63b   : > { %v1762_v47 = vsub.f32 %v1710_v45, %v1758_v58  ;;  %v1734_v62 = vsel %vm1122_vm15, %v1731_v30, %v1733_v60  ;;  %v3232_v30 = vpack.c.bf16 %v1838_v46, %v1837_v52 }
 0x63c   : > { %3325 = vpow2.f32 %v2411_v61  ;;  %v1738_v50 = vsub.f32 %v1712_v48, %v1734_v62  ;;  %v1834_v48 = vld [vmem:[#allocation9 + $0x48] sm:$0xff] }
 0x63e   : > { %v2412_v63 = vmul.f32 -1.442695, %v1738_v50 }
 0x640   : > { %3327 = vpow2.f32 %v2412_v63 }
 0x646   : > { %v3326_v0 = vpop.eup %3325 }
 0x647   : > { %v1745_v1 = vadd.f32 1.0, %v3326_v0 }
 0x649   : > { %3329 = vrcp.f32 %v1745_v1 }
 0x64a   : > { %v3328_v2 = vpop.eup %3327 }
 0x64b   : > { %v1746_v4 = vadd.f32 1.0, %v3328_v2 }
 0x64d   : > { %3331 = vrcp.f32 %v1746_v4 }
 0x653   : > { %v3330_v5 = vpop.eup %3329 }
 0x654   : > { %v1763_v6 = vmul.f32 %v3330_v5, %v1761_v54  ;;  %v1840_v54 = vld [vmem:[#allocation9 + $0x78] sm:$0xff]  ;;  %v2416_v5 = vadd.s32 4294967289, %v3867_v12 }
 0x655   : > { %v3236_v55 = vpack.c.bf16 %v1840_v54, %v1839_v53 }
 0x656   : > { %v1767_v7 = vrot.slane %v1763_v6, 1  ;;  %v2102_v6 = vmul.u32 2, %v2416_v5 }
 0x657   : > { %v3332_v8 = vpop.eup %3331 }
 0x658   : > { %v1764_v9 = vmul.f32 %v3332_v8, %v1762_v47  ;;  %v1773_v10 = vadd.f32 %v1767_v7, %v1710_v45  ;;  %v1833_v45 = vld [vmem:[#allocation9 + $0x40] sm:$0xff]  ;;  %v2104_v8 = vadd.s32 1, %v2102_v6 }
 0x65a   : > { %v1768_v11 = vrot.slane %v1764_v9, 1  ;;  %v1844_v14 = vrot.slane %v1773_v10, 7 }
 0x65c   : > { %v1769_v24 = vsel %vm521_vm1, %v1767_v7, %v1768_v11  ;;  %v1775_v13 = vadd.f32 %v1768_v11, %v1722_v56  ;;  %v2417_v7 = vadd.s32 4294967289, %v3873_v16 }
 0x65d   : > { %v1774_v15 = vadd.f32 %v1769_v24, %v1716_v27  ;;  %v3224_v27 = vpack.c.bf16 %v1834_v48, %v1833_v45 }
 0x65e   : > { %v1847_v23 = vrot.slane %v1775_v13, 7  ;;  %v2103_v9 = vmul.u32 2, %v2417_v7 }
 0x65f   : > { %v1845_v28 = vrot.slane %v1774_v15, 7 }
 0x660   : > { %v2105_v15 = vadd.s32 1, %v2103_v9 }
 0x661   : > { %v1846_v19 = vsel %vm1122_vm15, %v1844_v14, %v1845_v28  ;;  %v1848_v20 = vsel %vm1122_vm15, %v1845_v28, %v1847_v23 }
 0x662   : > { %v1851_v21 = vsel %vm521_vm1, %v1848_v20, 0.0  ;;  %v1853_v25 = vrot.slane %v1846_v19, 1  ;;  %v1858_v26 = vrot.slane %v1846_v19, 2  ;;  %vm2109_vm11 = vcmp.eq.s32.totalorder %v3875_v17, %v2105_v15 }
 0x663   : > { %v1854_v32 = vrot.slane %v1851_v21, 1  ;;  %v1859_v33 = vrot.slane %v1851_v21, 2 }
 0x665   : > { %v1855_v34 = vsel %vm521_vm1, %v1853_v25, %v1854_v32  ;;  %v1860_v35 = vsel %vm545_vm2, %v1858_v26, %v1859_v33  ;;  %vm2098_vm2 = vcmp.lt.s32.totalorder %v3867_v12, 7  ;;  %v2419_v12 = vsel %vm2109_vm11, 1.0, %v3504_v3 }
 0x666   : > { %1933 = vmatprep.mubr.f32.mxu0 %v1855_v34  ;;  %2886 = vmatprep.mubr.f32.mxu1 %v1860_v35  ;;  %v2106_v10 = vsel %vm2098_vm2, %v909_v18, %v2104_v8 }
 0x667   : > { %1934 = vmatmul.mubr.f32.vlgmr.msra.gmra.mrb[28].mxu0 %v1846_v19  ;;  %2887 = vmatmul.mubr.f32.vlgmr.msra.gmra.mrb[44].mxu1 %v1859_v33  ;;  %vm2108_vm9 = vcmp.eq.s32.totalorder %v3875_v17, %v2106_v10 }
 0x668   : > { %1938 = vmatprep.mubr.f32.mxu0 %v1854_v32  ;;  %3211 = vmatpush3.bf16.msra.mxu0 %v4011_v37  ;;  %v1835_v37 = vld [vmem:[#allocation9 + $0x50] sm:$0xff] }
 0x669   : > { %3213 = vmatprep.subr.bf16.mxu0 %v3212_v36  ;;  %2191 = vmatprep.mubr.f32.mxu1 %v3504_v3  ;;  %v3228_v51 = vpack.c.bf16 %v1836_v49, %v1835_v37 }
 0x66b   : > { %2414 = vmatmul.mubr.msk.f32.gmra.mrb[30].mxu0 %vm521_vm1, %v1848_v20  ;;  %vm2020_vm1 = vcmp.lt.s32.totalorder %v3873_v16, 13  ;;  %v2418_v16 = vsel %vm2108_vm9, 1.0, %v3504_v3 }
 0x66c   : > { %3215 = vmatpush3.bf16.msra.mxu0 %v3212_v36 }
 0x66d   : > { %3217 = vmatprep.subr.bf16.mxu0 %v3216_v41 }
 0x670   : > { %3219 = vmatpush3.bf16.msra.mxu0 %v3216_v41 }
 0x671   : > { %3221 = vmatprep.subr.bf16.mxu0 %v3220_v44 }
 0x674   : > { %3223 = vmatpush3.bf16.msra.mxu0 %v3220_v44 }
 0x675   : > { %3225 = vmatprep.subr.bf16.mxu0 %v3224_v27 }
 0x678   : > { %3227 = vmatpush3.bf16.msra.mxu0 %v3224_v27 }
 0x679   : > { %3229 = vmatprep.subr.bf16.mxu0 %v3228_v51 }
 0x67c   : > { %3231 = vmatpush3.bf16.msra.mxu0 %v3228_v51 }
 0x67d   : > { %3233 = vmatprep.subr.bf16.mxu0 %v3232_v30 }
 0x680   : > { %3235 = vmatpush3.bf16.msra.mxu0 %v3232_v30 }
 0x681   : > { %3237 = vmatprep.subr.bf16.mxu0 %v3236_v55 }
 0x684   : > { %3239 = vmatpush3.bf16.msra.mxu0 %v3236_v55 }
 0x73a   : > { %v2648_v56 = vpop.f32.mrb[28].mxu0  ;;  %v2888_v57 = vpop.f32.mrb[44].mxu1 }
 0x73b   : > { %v2649_v59 = vpop.f32.mrb[29].mxu0  ;;  %v2010_v60 = vpop.f32.mrb[45].mxu1 }
 0x73c   : > { %v2650_v61 = vadd.f32 %v2649_v59, %v2648_v56 }
 0x73e   : > { %v1936_v58 = vadd.f32 %v2650_v61, %v2413_v39  ;;  %v2651_v47 = vpop.f32.mrb[30].mxu0 }
 0x73f   : > { %v2652_v62 = vpop.f32.mrb[31].mxu0 }
 0x740   : > { %v2011_v50 = vadd.f32 %v2010_v60, %v1936_v58  ;;  %v2653_v63 = vadd.f32 %v2652_v62, %v2651_v47 }
 0x742   : > { %v1941_v0 = vadd.f32 %v2653_v63, %v2413_v39  ;;  %2921 = vmatprep.mubr.f32.mxu0 %v2011_v50 }
 0x744   : > { %v2016_v1 = vadd.f32 %v2888_v57, %v1941_v0 }
 0x746   : > { %v2022_v2 = vsel %vm2020_vm1, %v2016_v1, 0.0  ;;  %2922 = vmatmul.mubr.msk.f32.vlgmr.msra.gmra.mrb[32].mxu0 %vm2020_vm1, %v2016_v1 }
 0x747   : > { %v3243_v4 = vpack.c.bf16 %v2022_v2, %v2011_v50 }
 0x819   : > { %v2923_v11 = vpop.f32.mrb[32].mxu0 }
 0x81a   : > { %v2089_v24 = vpop.f32.mrb[33].mxu0 }
 0x81b   : > { %v3240_v13 = vpack.c.bf16 %v2923_v11, %v2089_v24 }
 0x81d   : > { %3242 = vmatprep.subr.msk.bf16.mxu1 %vm3880_vm4, %v3240_v13 }
 0x81e   : > { %3245 = vmatpush1.bf16.msk.msra.mxu1 %vm3880_vm4, %v3243_v4  ;;  %vm2230_vm4 = vcmask 64519  }
 0x821   : > { %2422 = vmatmul.mubr.msk.f32.vlgmr.msra.gmra.mrb[46].mxu1 %vm2114_vm10, %v2418_v16 }
 0x822   : > { %2197 = vmatprep.mubr.f32.mxu1 %v3504_v3 }
 0x825   : > { %2423 = vmatmul.mubr.msk.f32.gmra.mrb[48].mxu1 %vm2114_vm10, %v2419_v12 }
 0x8f4   : > { %v2193_v18 = vpop.f32.mrb[46].mxu1 }
 0x8f5   : > { %v2195_v23 = vpop.f32.mrb[47].mxu1  ;;  %v2219_v28 = vrot.slane %v2193_v18, 7 }
 0x8f6   : > { %v2206_v22 = vrot.slane %v2195_v23, 7 }
 0x8f8   : > { %v2199_v14 = vpop.f32.mrb[48].mxu1 }
 0x8f9   : > { %v2220_v19 = vrot.slane %v2199_v14, 7  ;;  %v2201_v20 = vpop.f32.mrb[49].mxu1 }
 0x8fa   : > { %v2207_v21 = vrot.slane %v2201_v20, 7 }
 0x8fb   : > { %v2221_v25 = vsel %vm1122_vm15, %v2219_v28, %v2220_v19 }
 0x8fc   : > { %v2223_v26 = vsub.f32 %v2193_v18, %v2221_v25  ;;  %v2208_v17 = vsel %vm1122_vm15, %v2206_v22, %v2207_v21 }
 0x8fd   : > { %v2210_v29 = vsub.f32 %v2195_v23, %v2208_v17 }
 0x8ff   : > { %v2424_v31 = vmul.f32 -1.442695, %v2210_v29 }
 0x901   : > { %3333 = vpow2.f32 %v2424_v31 }
 0x90b   : > { %v3334_v32 = vpop.eup %3333 }
 0x90c   : > { %v2214_v3 = vadd.f32 1.0, %v3334_v32 }
 0x90e   : > { %3335 = vrcp.f32 %v2214_v3 }
 0x918   : > { %v3336_v33 = vpop.eup %3335 }
 0x919   : > { %v2224_v34 = vmul.f32 %v3336_v33, %v2223_v26 }
 0x91b   : > { %v2226_v35 = vrot.slane %v2224_v34, 1 }
 0x91d   : > { %v2228_v36 = vadd.f32 %v2226_v35, %v2193_v18  ;;  %v2229_v38 = vadd.f32 %v2226_v35, %v2199_v14 }
 0x91f   : > { %2231 = vst.msk [vmem:[%s430_s26 - $0x7] sm:$0x80] %vm2230_vm4, %v2228_v36 }
 0x920   : > { %2233 = vst.msk [vmem:[%s430_s26 + $0x1] sm:$0x3f] %vm2232_vm12, %v2229_v38 }
 0x921 PF: > { %s23_s13 = sadd.s32 1, %s3495_s13  }
 0x922   : > { %p20_p6 = scmp.ge.s32.totalorder %s23_s13, 4  }
 0x924   :  { %22 = sbr.rel (!%p20_p6) target bundleno = 3 (0x3), region = 111 }
 0x92b   :  { %2253 = vsyncpa [#allocation3], 1 }
 0x92c   :  { %2255 = vsyncpa [#allocation3 + $0x1], 1 }
 0x92d   :  { %2256 = vsyncpa [#allocation5], 1 }
 0x92e   :  { %2257 = vsyncpa [#allocation8], 1 }

</bundles_post_ra>
